<compile_context>
chip_gen: v6e
topology: v6e:2x2x1
jax: 0.10.0
libtpu: 0.0.40
codegen_flags: <defaults>
</compile_context>

<pallas_src>
import numpy as np
import jax
import jax.numpy as jnp
from jax import lax
from jax.experimental import pallas as pl
from jax.experimental.pallas import tpu as pltpu


# ----------------------------- Pallas kernel -------------------------------
def _dkt_lstm_kernel(gin0_ref, h_init_ref, c_init_ref,
                     whh0_ref, w1_ref, b1_ref, wout_ref, bout_ref,
                     out_ref, hn_ref, cn_ref,
                     h1_hist):
    """2-layer LSTM recurrence (layer-0 input GEMM precomputed) + hoisted
    output projection, all resident in VMEM."""
    T, B, G = gin0_ref.shape        # G = 4H
    H = G // 4

    # Hoist weight / bias loads out of the recurrence (no per-step re-loads).
    whh0 = whh0_ref[...]            # (H, 4H)
    w1 = w1_ref[...]                # (2H, 4H)  == [W_ih1^T ; W_hh1^T]
    b1 = b1_ref[...]                # (1, 4H)

    h0 = h_init_ref[0]
    h1 = h_init_ref[1]
    c0 = c_init_ref[0]
    c1 = c_init_ref[1]

    def lstm_gates(gates, c):
        # 4H == 128 lanes -> one full-vreg sigmoid + one full-vreg tanh
        # instead of four fragment transcendentals.
        sig = jax.nn.sigmoid(gates)
        tan = jnp.tanh(gates)
        i = sig[:, 0 * H:1 * H]
        f = sig[:, 1 * H:2 * H]
        g = tan[:, 2 * H:3 * H]
        o = sig[:, 3 * H:4 * H]
        c_new = f * c + i * g
        h_new = o * jnp.tanh(c_new)
        return h_new, c_new

    # T is small and static -> fully unrolled, every index is static.
    # TODO(synk): for long sequences switch to a time-chunked grid (or
    # fori_loop with partial unroll) so instruction count stays bounded.
    for t in range(T):
        # layer 0: only the recurrent half is on the serial critical path.
        g0 = gin0_ref[t] + jnp.dot(h0, whh0, preferred_element_type=jnp.float32)
        h0, c0 = lstm_gates(g0, c0)
        # layer 1: single fused matmul over [h0_new | h1_prev].
        x1 = jnp.concatenate([h0, h1], axis=-1)                    # (B, 2H)
        g1 = jnp.dot(x1, w1, preferred_element_type=jnp.float32) + b1
        h1, c1 = lstm_gates(g1, c1)
        h1_hist[pl.ds(t * B, B), :] = h1                           # (B, H) row block

    hn_ref[0] = h0
    hn_ref[1] = h1
    cn_ref[0] = c0
    cn_ref[1] = c1

    # Output Linear + sigmoid hoisted out of the loop: one (T*B, H) @ (H, Spad)
    # matmul + a single lane-dense (Spad multiple of 128) bulk store.
    logits = (jnp.dot(h1_hist[...], wout_ref[...],
                      preferred_element_type=jnp.float32) + bout_ref[...])
    out_ref[...] = jax.nn.sigmoid(logits)


# ------------------------------- wrapper ------------------------------------
def dkt_forward(params, inputs, skills, hidden=None):
    """inputs: (B, T) float32 correctness bit; skills: (B, T) int32 skill id."""
    B, T = inputs.shape
    H = params["w_hh_l0"].shape[1]
    S = params["w_out"].shape[0]
    S_pad = ((S + 127) // 128) * 128

    # ---- XLA glue: embedding lookup, concat, and the NON-recurrent layer-0
    # input projection (x @ W_ih0^T + b_ih0 + b_hh0), built time-major. ----
    inputs_tm = inputs.T.astype(jnp.float32)                       # (T, B)
    skill_emb = params["emb"][skills.T]                            # (T, B, H//2)
    combined = jnp.concatenate([inputs_tm[..., None], skill_emb], axis=-1)
    b0 = params["b_ih_l0"] + params["b_hh_l0"]
    gin0 = (combined @ params["w_ih_l0"].T + b0).astype(jnp.float32)  # (T, B, 4H)

    if hidden is None:
        h_init = jnp.zeros((2, B, H), jnp.float32)
        c_init = jnp.zeros((2, B, H), jnp.float32)
    else:
        h_init, c_init = hidden

    whh0_t = params["w_hh_l0"].T                                   # (H, 4H)
    w1cat = jnp.concatenate([params["w_ih_l1"].T,
                             params["w_hh_l1"].T], axis=0)         # (2H, 4H)
    b1 = (params["b_ih_l1"] + params["b_hh_l1"]).reshape(1, 4 * H)
    # Lane-pad the output head to a multiple of 128 so the kernel store is dense.
    wout_pad = jnp.zeros((H, S_pad), jnp.float32).at[:, :S].set(params["w_out"].T)
    bout_pad = jnp.zeros((1, S_pad), jnp.float32).at[:, :S].set(params["b_out"])

    vmem = pl.BlockSpec(memory_space=pltpu.MemorySpace.VMEM)
    # TODO(synk): for realistic batch sizes (B >= 16) add a batch grid axis with
    # dimension_semantics=("parallel",) so v7x's two TensorCores split the batch.
    out2d, h_n, c_n = pl.pallas_call(
        _dkt_lstm_kernel,
        out_shape=(
            jax.ShapeDtypeStruct((T * B, S_pad), jnp.float32),
            jax.ShapeDtypeStruct((2, B, H), jnp.float32),
            jax.ShapeDtypeStruct((2, B, H), jnp.float32),
        ),
        in_specs=[vmem] * 8,
        out_specs=(vmem, vmem, vmem),
        scratch_shapes=[pltpu.VMEM((T * B, H), jnp.float32)],
    )(gin0, h_init, c_init, whh0_t, w1cat, b1, wout_pad, bout_pad)

    # (T*B, S_pad) -> (B, T, S): slice off the lane padding, back to batch_first.
    output = out2d.reshape(T, B, S_pad)[:, :, :S].transpose(1, 0, 2)
    return output, (h_n, c_n)


# -------------------------- pure-JAX reference -------------------------------
def dkt_reference(params, inputs, skills, hidden=None):
    B, T = inputs.shape
    H = params["w_hh_l0"].shape[1]
    skill_emb = params["emb"][skills]
    combined = jnp.concatenate([inputs[..., None], skill_emb], axis=-1)
    x_tm = jnp.transpose(combined, (1, 0, 2)).astype(jnp.float32)

    if hidden is None:
        h = jnp.zeros((2, B, H), jnp.float32)
        c = jnp.zeros((2, B, H), jnp.float32)
    else:
        h, c = hidden

    def cell(x, h, c, wih, whh, bih, bhh):
        gates = x @ wih.T + bih + h @ whh.T + bhh
        i, f, g, o = jnp.split(gates, 4, axis=-1)
        c_new = jax.nn.sigmoid(f) * c + jax.nn.sigmoid(i) * jnp.tanh(g)
        h_new = jax.nn.sigmoid(o) * jnp.tanh(c_new)
        return h_new, c_new

    def step(carry, x_t):
        h, c = carry
        h0, c0 = cell(x_t, h[0], c[0], params["w_ih_l0"], params["w_hh_l0"],
                      params["b_ih_l0"], params["b_hh_l0"])
        h1, c1 = cell(h0, h[1], c[1], params["w_ih_l1"], params["w_hh_l1"],
                      params["b_ih_l1"], params["b_hh_l1"])
        out_t = jax.nn.sigmoid(h1 @ params["w_out"].T + params["b_out"])
        return (jnp.stack([h0, h1]), jnp.stack([c0, c1])), out_t

    (h_n, c_n), out_tm = lax.scan(step, (h, c), x_tm)
    return jnp.transpose(out_tm, (1, 0, 2)), (h_n, c_n)


# --------------------------------- main --------------------------------------
def init_params(key, num_skills, hidden_size):
    H = hidden_size
    S = num_skills
    D0 = 1 + H // 2   # actual width produced by the forward pass
    k = 1.0 / np.sqrt(H)
    ks = jax.random.split(key, 12)
    u = lambda kk, shape: jax.random.uniform(kk, shape, jnp.float32, -k, k)
    return {
        "emb":     jax.random.normal(ks[0], (S + 1, H // 2), jnp.float32),
        "w_ih_l0": u(ks[1], (4 * H, D0)),
        "w_hh_l0": u(ks[2], (4 * H, H)),
        "b_ih_l0": u(ks[3], (4 * H,)),
        "b_hh_l0": u(ks[4], (4 * H,)),
        "w_ih_l1": u(ks[5], (4 * H, H)),
        "w_hh_l1": u(ks[6], (4 * H, H)),
        "b_ih_l1": u(ks[7], (4 * H,)),
        "b_hh_l1": u(ks[8], (4 * H,)),
        "w_out":   u(ks[9], (S, H)),
        "b_out":   u(ks[10], (S,)),
    }


if __name__ == "__main__":
    num_skills, hidden_size = 16, 32
    B, T = 2, 8

    key = jax.random.PRNGKey(0)
    kp, ki, ks = jax.random.split(key, 3)
    params = init_params(kp, num_skills, hidden_size)

    inputs = jax.random.bernoulli(ki, 0.5, (B, T)).astype(jnp.float32)
    skills = jax.random.randint(ks, (B, T), 0, num_skills + 1, jnp.int32)

    out, (h_n, c_n) = dkt_forward(params, inputs, skills)
    jax.block_until_ready((out, h_n, c_n))

    ref_out, (ref_h, ref_c) = dkt_reference(params, inputs, skills)
    assert out.shape == (B, T, num_skills)
    assert h_n.shape == (2, B, hidden_size) and c_n.shape == (2, B, hidden_size)
    np.testing.assert_allclose(np.asarray(out), np.asarray(ref_out), atol=1e-5, rtol=1e-5)
    np.testing.assert_allclose(np.asarray(h_n), np.asarray(ref_h), atol=1e-5, rtol=1e-5)
    np.testing.assert_allclose(np.asarray(c_n), np.asarray(ref_c), atol=1e-5, rtol=1e-5)

    print("KERNEL_OK")
</pallas_src>

<mosaic_0001>
module attributes {stable_mosaic.version = 11 : i64} {
  func.func @_dkt_lstm_kernel(%arg0: memref<8x2x128xf32, #tpu.memory_space<vmem>>, %arg1: memref<2x2x32xf32, #tpu.memory_space<vmem>>, %arg2: memref<2x2x32xf32, #tpu.memory_space<vmem>>, %arg3: memref<32x128xf32, #tpu.memory_space<vmem>>, %arg4: memref<64x128xf32, #tpu.memory_space<vmem>>, %arg5: memref<1x128xf32, #tpu.memory_space<vmem>>, %arg6: memref<32x128xf32, #tpu.memory_space<vmem>>, %arg7: memref<1x128xf32, #tpu.memory_space<vmem>>, %arg8: memref<16x128xf32, #tpu.memory_space<vmem>>, %arg9: memref<2x2x32xf32, #tpu.memory_space<vmem>>, %arg10: memref<2x2x32xf32, #tpu.memory_space<vmem>>, %arg11: memref<16x32xf32, #tpu.memory_space<vmem>>) attributes {dimension_semantics = [], scalar_prefetch = 0 : i64, scratch_operands = 1 : i64, tpu.core_type = #tpu.core_type<tc>} {
    %c0 = arith.constant 0 : index
    %c0_0 = arith.constant 0 : index
    %0 = vector.load %arg3[%c0, %c0_0] : memref<32x128xf32, #tpu.memory_space<vmem>>, vector<32x128xf32>
    %c0_1 = arith.constant 0 : index
    %c0_2 = arith.constant 0 : index
    %1 = vector.load %arg4[%c0_1, %c0_2] : memref<64x128xf32, #tpu.memory_space<vmem>>, vector<64x128xf32>
    %c0_3 = arith.constant 0 : index
    %c0_4 = arith.constant 0 : index
    %2 = vector.load %arg5[%c0_3, %c0_4] : memref<1x128xf32, #tpu.memory_space<vmem>>, vector<1x128xf32>
    %c0_5 = arith.constant 0 : index
    %c0_6 = arith.constant 0 : index
    %c0_7 = arith.constant 0 : index
    %3 = vector.load %arg1[%c0_5, %c0_6, %c0_7] : memref<2x2x32xf32, #tpu.memory_space<vmem>>, vector<1x2x32xf32>
    %4 = vector.shape_cast %3 : vector<1x2x32xf32> to vector<2x32xf32>
    %c1 = arith.constant 1 : index
    %c0_8 = arith.constant 0 : index
    %c0_9 = arith.constant 0 : index
    %5 = vector.load %arg1[%c1, %c0_8, %c0_9] : memref<2x2x32xf32, #tpu.memory_space<vmem>>, vector<1x2x32xf32>
    %6 = vector.shape_cast %5 : vector<1x2x32xf32> to vector<2x32xf32>
    %c0_10 = arith.constant 0 : index
    %c0_11 = arith.constant 0 : index
    %c0_12 = arith.constant 0 : index
    %7 = vector.load %arg2[%c0_10, %c0_11, %c0_12] : memref<2x2x32xf32, #tpu.memory_space<vmem>>, vector<1x2x32xf32>
    %8 = vector.shape_cast %7 : vector<1x2x32xf32> to vector<2x32xf32>
    %c1_13 = arith.constant 1 : index
    %c0_14 = arith.constant 0 : index
    %c0_15 = arith.constant 0 : index
    %9 = vector.load %arg2[%c1_13, %c0_14, %c0_15] : memref<2x2x32xf32, #tpu.memory_space<vmem>>, vector<1x2x32xf32>
    %10 = vector.shape_cast %9 : vector<1x2x32xf32> to vector<2x32xf32>
    %c0_16 = arith.constant 0 : index
    %c0_17 = arith.constant 0 : index
    %c0_18 = arith.constant 0 : index
    %11 = vector.load %arg0[%c0_16, %c0_17, %c0_18] : memref<8x2x128xf32, #tpu.memory_space<vmem>>, vector<1x2x128xf32>
    %12 = vector.shape_cast %11 : vector<1x2x128xf32> to vector<2x128xf32>
    %cst = arith.constant dense<0.000000e+00> : vector<2x128xf32>
    %13 = tpu.matmul %4, %0, %cst {dimension_numbers = #tpu.dot_dimension_numbers<[1], [0], [0], [1], [0, 0, 1, 1], [], []>} : vector<2x32xf32>, vector<32x128xf32>, vector<2x128xf32> -> vector<2x128xf32>
    %14 = arith.addf %12, %13 : vector<2x128xf32>
    %15 = arith.negf %14 : vector<2x128xf32>
    %16 = math.exp %15 : vector<2x128xf32>
    %cst_19 = arith.constant 1.000000e+00 : f32
    %17 = vector.broadcast %cst_19 : f32 to vector<2x128xf32>
    %18 = arith.addf %17, %16 : vector<2x128xf32>
    %19 = arith.divf %17, %18 : vector<2x128xf32>
    %20 = math.tanh %14 : vector<2x128xf32>
    %21 = vector.extract_strided_slice %19 {offsets = [0, 0], sizes = [2, 32], strides = [1, 1]} : vector<2x128xf32> to vector<2x32xf32>
    %22 = vector.extract_strided_slice %19 {offsets = [0, 32], sizes = [2, 32], strides = [1, 1]} : vector<2x128xf32> to vector<2x32xf32>
    %23 = vector.extract_strided_slice %20 {offsets = [0, 64], sizes = [2, 32], strides = [1, 1]} : vector<2x128xf32> to vector<2x32xf32>
    %24 = vector.extract_strided_slice %19 {offsets = [0, 96], sizes = [2, 32], strides = [1, 1]} : vector<2x128xf32> to vector<2x32xf32>
    %25 = arith.mulf %22, %8 : vector<2x32xf32>
    %26 = arith.mulf %21, %23 : vector<2x32xf32>
    %27 = arith.addf %25, %26 : vector<2x32xf32>
    %28 = math.tanh %27 : vector<2x32xf32>
    %29 = arith.mulf %24, %28 : vector<2x32xf32>
    %30 = tpu.concatenate %29, %6 in 1 : vector<2x32xf32>, vector<2x32xf32> -> vector<2x64xf32>
    %cst_20 = arith.constant dense<0.000000e+00> : vector<2x128xf32>
    %31 = tpu.matmul %30, %1, %cst_20 {dimension_numbers = #tpu.dot_dimension_numbers<[1], [0], [0], [1], [0, 0, 1, 1], [], []>} : vector<2x64xf32>, vector<64x128xf32>, vector<2x128xf32> -> vector<2x128xf32>
    %32 = vector.broadcast %2 : vector<1x128xf32> to vector<2x128xf32>
    %33 = arith.addf %31, %32 : vector<2x128xf32>
    %34 = arith.negf %33 : vector<2x128xf32>
    %35 = math.exp %34 : vector<2x128xf32>
    %cst_21 = arith.constant 1.000000e+00 : f32
    %36 = vector.broadcast %cst_21 : f32 to vector<2x128xf32>
    %37 = arith.addf %36, %35 : vector<2x128xf32>
    %38 = arith.divf %36, %37 : vector<2x128xf32>
    %39 = math.tanh %33 : vector<2x128xf32>
    %40 = vector.extract_strided_slice %38 {offsets = [0, 0], sizes = [2, 32], strides = [1, 1]} : vector<2x128xf32> to vector<2x32xf32>
    %41 = vector.extract_strided_slice %38 {offsets = [0, 32], sizes = [2, 32], strides = [1, 1]} : vector<2x128xf32> to vector<2x32xf32>
    %42 = vector.extract_strided_slice %39 {offsets = [0, 64], sizes = [2, 32], strides = [1, 1]} : vector<2x128xf32> to vector<2x32xf32>
    %43 = vector.extract_strided_slice %38 {offsets = [0, 96], sizes = [2, 32], strides = [1, 1]} : vector<2x128xf32> to vector<2x32xf32>
    %44 = arith.mulf %41, %10 : vector<2x32xf32>
    %45 = arith.mulf %40, %42 : vector<2x32xf32>
    %46 = arith.addf %44, %45 : vector<2x32xf32>
    %47 = math.tanh %46 : vector<2x32xf32>
    %48 = arith.mulf %43, %47 : vector<2x32xf32>
    %c0_22 = arith.constant 0 : index
    %c0_23 = arith.constant 0 : index
    %49 = vector.load %arg11[%c0_22, %c0_23] : memref<16x32xf32, #tpu.memory_space<vmem>>, vector<2x32xf32>
    tpu.vector_store %arg11[%c0_22, %c0_23], %48 {strides = array<i32>} : memref<16x32xf32, #tpu.memory_space<vmem>>, vector<2x32xf32>,
    %c1_24 = arith.constant 1 : index
    %c0_25 = arith.constant 0 : index
    %c0_26 = arith.constant 0 : index
    %50 = vector.load %arg0[%c1_24, %c0_25, %c0_26] : memref<8x2x128xf32, #tpu.memory_space<vmem>>, vector<1x2x128xf32>
    %51 = vector.shape_cast %50 : vector<1x2x128xf32> to vector<2x128xf32>
    %cst_27 = arith.constant dense<0.000000e+00> : vector<2x128xf32>
    %52 = tpu.matmul %29, %0, %cst_27 {dimension_numbers = #tpu.dot_dimension_numbers<[1], [0], [0], [1], [0, 0, 1, 1], [], []>} : vector<2x32xf32>, vector<32x128xf32>, vector<2x128xf32> -> vector<2x128xf32>
    %53 = arith.addf %51, %52 : vector<2x128xf32>
    %54 = arith.negf %53 : vector<2x128xf32>
    %55 = math.exp %54 : vector<2x128xf32>
    %cst_28 = arith.constant 1.000000e+00 : f32
    %56 = vector.broadcast %cst_28 : f32 to vector<2x128xf32>
    %57 = arith.addf %56, %55 : vector<2x128xf32>
    %58 = arith.divf %56, %57 : vector<2x128xf32>
    %59 = math.tanh %53 : vector<2x128xf32>
    %60 = vector.extract_strided_slice %58 {offsets = [0, 0], sizes = [2, 32], strides = [1, 1]} : vector<2x128xf32> to vector<2x32xf32>
    %61 = vector.extract_strided_slice %58 {offsets = [0, 32], sizes = [2, 32], strides = [1, 1]} : vector<2x128xf32> to vector<2x32xf32>
    %62 = vector.extract_strided_slice %59 {offsets = [0, 64], sizes = [2, 32], strides = [1, 1]} : vector<2x128xf32> to vector<2x32xf32>
    %63 = vector.extract_strided_slice %58 {offsets = [0, 96], sizes = [2, 32], strides = [1, 1]} : vector<2x128xf32> to vector<2x32xf32>
    %64 = arith.mulf %61, %27 : vector<2x32xf32>
    %65 = arith.mulf %60, %62 : vector<2x32xf32>
    %66 = arith.addf %64, %65 : vector<2x32xf32>
    %67 = math.tanh %66 : vector<2x32xf32>
    %68 = arith.mulf %63, %67 : vector<2x32xf32>
    %69 = tpu.concatenate %68, %48 in 1 : vector<2x32xf32>, vector<2x32xf32> -> vector<2x64xf32>
    %cst_29 = arith.constant dense<0.000000e+00> : vector<2x128xf32>
    %70 = tpu.matmul %69, %1, %cst_29 {dimension_numbers = #tpu.dot_dimension_numbers<[1], [0], [0], [1], [0, 0, 1, 1], [], []>} : vector<2x64xf32>, vector<64x128xf32>, vector<2x128xf32> -> vector<2x128xf32>
    %71 = vector.broadcast %2 : vector<1x128xf32> to vector<2x128xf32>
    %72 = arith.addf %70, %71 : vector<2x128xf32>
    %73 = arith.negf %72 : vector<2x128xf32>
    %74 = math.exp %73 : vector<2x128xf32>
    %cst_30 = arith.constant 1.000000e+00 : f32
    %75 = vector.broadcast %cst_30 : f32 to vector<2x128xf32>
    %76 = arith.addf %75, %74 : vector<2x128xf32>
    %77 = arith.divf %75, %76 : vector<2x128xf32>
    %78 = math.tanh %72 : vector<2x128xf32>
    %79 = vector.extract_strided_slice %77 {offsets = [0, 0], sizes = [2, 32], strides = [1, 1]} : vector<2x128xf32> to vector<2x32xf32>
    %80 = vector.extract_strided_slice %77 {offsets = [0, 32], sizes = [2, 32], strides = [1, 1]} : vector<2x128xf32> to vector<2x32xf32>
    %81 = vector.extract_strided_slice %78 {offsets = [0, 64], sizes = [2, 32], strides = [1, 1]} : vector<2x128xf32> to vector<2x32xf32>
    %82 = vector.extract_strided_slice %77 {offsets = [0, 96], sizes = [2, 32], strides = [1, 1]} : vector<2x128xf32> to vector<2x32xf32>
    %83 = arith.mulf %80, %46 : vector<2x32xf32>
    %84 = arith.mulf %79, %81 : vector<2x32xf32>
    %85 = arith.addf %83, %84 : vector<2x32xf32>
    %86 = math.tanh %85 : vector<2x32xf32>
    %87 = arith.mulf %82, %86 : vector<2x32xf32>
    %c2 = arith.constant 2 : index
    %c0_31 = arith.constant 0 : index
    %88 = vector.load %arg11[%c2, %c0_31] : memref<16x32xf32, #tpu.memory_space<vmem>>, vector<2x32xf32>
    tpu.vector_store %arg11[%c2, %c0_31], %87 {strides = array<i32>} : memref<16x32xf32, #tpu.memory_space<vmem>>, vector<2x32xf32>,
    %c2_32 = arith.constant 2 : index
    %c0_33 = arith.constant 0 : index
    %c0_34 = arith.constant 0 : index
    %89 = vector.load %arg0[%c2_32, %c0_33, %c0_34] : memref<8x2x128xf32, #tpu.memory_space<vmem>>, vector<1x2x128xf32>
    %90 = vector.shape_cast %89 : vector<1x2x128xf32> to vector<2x128xf32>
    %cst_35 = arith.constant dense<0.000000e+00> : vector<2x128xf32>
    %91 = tpu.matmul %68, %0, %cst_35 {dimension_numbers = #tpu.dot_dimension_numbers<[1], [0], [0], [1], [0, 0, 1, 1], [], []>} : vector<2x32xf32>, vector<32x128xf32>, vector<2x128xf32> -> vector<2x128xf32>
    %92 = arith.addf %90, %91 : vector<2x128xf32>
    %93 = arith.negf %92 : vector<2x128xf32>
    %94 = math.exp %93 : vector<2x128xf32>
    %cst_36 = arith.constant 1.000000e+00 : f32
    %95 = vector.broadcast %cst_36 : f32 to vector<2x128xf32>
    %96 = arith.addf %95, %94 : vector<2x128xf32>
    %97 = arith.divf %95, %96 : vector<2x128xf32>
    %98 = math.tanh %92 : vector<2x128xf32>
    %99 = vector.extract_strided_slice %97 {offsets = [0, 0], sizes = [2, 32], strides = [1, 1]} : vector<2x128xf32> to vector<2x32xf32>
    %100 = vector.extract_strided_slice %97 {offsets = [0, 32], sizes = [2, 32], strides = [1, 1]} : vector<2x128xf32> to vector<2x32xf32>
    %101 = vector.extract_strided_slice %98 {offsets = [0, 64], sizes = [2, 32], strides = [1, 1]} : vector<2x128xf32> to vector<2x32xf32>
    %102 = vector.extract_strided_slice %97 {offsets = [0, 96], sizes = [2, 32], strides = [1, 1]} : vector<2x128xf32> to vector<2x32xf32>
    %103 = arith.mulf %100, %66 : vector<2x32xf32>
    %104 = arith.mulf %99, %101 : vector<2x32xf32>
    %105 = arith.addf %103, %104 : vector<2x32xf32>
    %106 = math.tanh %105 : vector<2x32xf32>
    %107 = arith.mulf %102, %106 : vector<2x32xf32>
    %108 = tpu.concatenate %107, %87 in 1 : vector<2x32xf32>, vector<2x32xf32> -> vector<2x64xf32>
    %cst_37 = arith.constant dense<0.000000e+00> : vector<2x128xf32>
    %109 = tpu.matmul %108, %1, %cst_37 {dimension_numbers = #tpu.dot_dimension_numbers<[1], [0], [0], [1], [0, 0, 1, 1], [], []>} : vector<2x64xf32>, vector<64x128xf32>, vector<2x128xf32> -> vector<2x128xf32>
    %110 = vector.broadcast %2 : vector<1x128xf32> to vector<2x128xf32>
    %111 = arith.addf %109, %110 : vector<2x128xf32>
    %112 = arith.negf %111 : vector<2x128xf32>
    %113 = math.exp %112 : vector<2x128xf32>
    %cst_38 = arith.constant 1.000000e+00 : f32
    %114 = vector.broadcast %cst_38 : f32 to vector<2x128xf32>
    %115 = arith.addf %114, %113 : vector<2x128xf32>
    %116 = arith.divf %114, %115 : vector<2x128xf32>
    %117 = math.tanh %111 : vector<2x128xf32>
    %118 = vector.extract_strided_slice %116 {offsets = [0, 0], sizes = [2, 32], strides = [1, 1]} : vector<2x128xf32> to vector<2x32xf32>
    %119 = vector.extract_strided_slice %116 {offsets = [0, 32], sizes = [2, 32], strides = [1, 1]} : vector<2x128xf32> to vector<2x32xf32>
    %120 = vector.extract_strided_slice %117 {offsets = [0, 64], sizes = [2, 32], strides = [1, 1]} : vector<2x128xf32> to vector<2x32xf32>
    %121 = vector.extract_strided_slice %116 {offsets = [0, 96], sizes = [2, 32], strides = [1, 1]} : vector<2x128xf32> to vector<2x32xf32>
    %122 = arith.mulf %119, %85 : vector<2x32xf32>
    %123 = arith.mulf %118, %120 : vector<2x32xf32>
    %124 = arith.addf %122, %123 : vector<2x32xf32>
    %125 = math.tanh %124 : vector<2x32xf32>
    %126 = arith.mulf %121, %125 : vector<2x32xf32>
    %c4 = arith.constant 4 : index
    %c0_39 = arith.constant 0 : index
    %127 = vector.load %arg11[%c4, %c0_39] : memref<16x32xf32, #tpu.memory_space<vmem>>, vector<2x32xf32>
    tpu.vector_store %arg11[%c4, %c0_39], %126 {strides = array<i32>} : memref<16x32xf32, #tpu.memory_space<vmem>>, vector<2x32xf32>,
    %c3 = arith.constant 3 : index
    %c0_40 = arith.constant 0 : index
    %c0_41 = arith.constant 0 : index
    %128 = vector.load %arg0[%c3, %c0_40, %c0_41] : memref<8x2x128xf32, #tpu.memory_space<vmem>>, vector<1x2x128xf32>
    %129 = vector.shape_cast %128 : vector<1x2x128xf32> to vector<2x128xf32>
    %cst_42 = arith.constant dense<0.000000e+00> : vector<2x128xf32>
    %130 = tpu.matmul %107, %0, %cst_42 {dimension_numbers = #tpu.dot_dimension_numbers<[1], [0], [0], [1], [0, 0, 1, 1], [], []>} : vector<2x32xf32>, vector<32x128xf32>, vector<2x128xf32> -> vector<2x128xf32>
    %131 = arith.addf %129, %130 : vector<2x128xf32>
    %132 = arith.negf %131 : vector<2x128xf32>
    %133 = math.exp %132 : vector<2x128xf32>
    %cst_43 = arith.constant 1.000000e+00 : f32
    %134 = vector.broadcast %cst_43 : f32 to vector<2x128xf32>
    %135 = arith.addf %134, %133 : vector<2x128xf32>
    %136 = arith.divf %134, %135 : vector<2x128xf32>
    %137 = math.tanh %131 : vector<2x128xf32>
    %138 = vector.extract_strided_slice %136 {offsets = [0, 0], sizes = [2, 32], strides = [1, 1]} : vector<2x128xf32> to vector<2x32xf32>
    %139 = vector.extract_strided_slice %136 {offsets = [0, 32], sizes = [2, 32], strides = [1, 1]} : vector<2x128xf32> to vector<2x32xf32>
    %140 = vector.extract_strided_slice %137 {offsets = [0, 64], sizes = [2, 32], strides = [1, 1]} : vector<2x128xf32> to vector<2x32xf32>
    %141 = vector.extract_strided_slice %136 {offsets = [0, 96], sizes = [2, 32], strides = [1, 1]} : vector<2x128xf32> to vector<2x32xf32>
    %142 = arith.mulf %139, %105 : vector<2x32xf32>
    %143 = arith.mulf %138, %140 : vector<2x32xf32>
    %144 = arith.addf %142, %143 : vector<2x32xf32>
    %145 = math.tanh %144 : vector<2x32xf32>
    %146 = arith.mulf %141, %145 : vector<2x32xf32>
    %147 = tpu.concatenate %146, %126 in 1 : vector<2x32xf32>, vector<2x32xf32> -> vector<2x64xf32>
    %cst_44 = arith.constant dense<0.000000e+00> : vector<2x128xf32>
    %148 = tpu.matmul %147, %1, %cst_44 {dimension_numbers = #tpu.dot_dimension_numbers<[1], [0], [0], [1], [0, 0, 1, 1], [], []>} : vector<2x64xf32>, vector<64x128xf32>, vector<2x128xf32> -> vector<2x128xf32>
    %149 = vector.broadcast %2 : vector<1x128xf32> to vector<2x128xf32>
    %150 = arith.addf %148, %149 : vector<2x128xf32>
    %151 = arith.negf %150 : vector<2x128xf32>
    %152 = math.exp %151 : vector<2x128xf32>
    %cst_45 = arith.constant 1.000000e+00 : f32
    %153 = vector.broadcast %cst_45 : f32 to vector<2x128xf32>
    %154 = arith.addf %153, %152 : vector<2x128xf32>
    %155 = arith.divf %153, %154 : vector<2x128xf32>
    %156 = math.tanh %150 : vector<2x128xf32>
    %157 = vector.extract_strided_slice %155 {offsets = [0, 0], sizes = [2, 32], strides = [1, 1]} : vector<2x128xf32> to vector<2x32xf32>
    %158 = vector.extract_strided_slice %155 {offsets = [0, 32], sizes = [2, 32], strides = [1, 1]} : vector<2x128xf32> to vector<2x32xf32>
    %159 = vector.extract_strided_slice %156 {offsets = [0, 64], sizes = [2, 32], strides = [1, 1]} : vector<2x128xf32> to vector<2x32xf32>
    %160 = vector.extract_strided_slice %155 {offsets = [0, 96], sizes = [2, 32], strides = [1, 1]} : vector<2x128xf32> to vector<2x32xf32>
    %161 = arith.mulf %158, %124 : vector<2x32xf32>
    %162 = arith.mulf %157, %159 : vector<2x32xf32>
    %163 = arith.addf %161, %162 : vector<2x32xf32>
    %164 = math.tanh %163 : vector<2x32xf32>
    %165 = arith.mulf %160, %164 : vector<2x32xf32>
    %c6 = arith.constant 6 : index
    %c0_46 = arith.constant 0 : index
    %166 = vector.load %arg11[%c6, %c0_46] : memref<16x32xf32, #tpu.memory_space<vmem>>, vector<2x32xf32>
    tpu.vector_store %arg11[%c6, %c0_46], %165 {strides = array<i32>} : memref<16x32xf32, #tpu.memory_space<vmem>>, vector<2x32xf32>,
    %c4_47 = arith.constant 4 : index
    %c0_48 = arith.constant 0 : index
    %c0_49 = arith.constant 0 : index
    %167 = vector.load %arg0[%c4_47, %c0_48, %c0_49] : memref<8x2x128xf32, #tpu.memory_space<vmem>>, vector<1x2x128xf32>
    %168 = vector.shape_cast %167 : vector<1x2x128xf32> to vector<2x128xf32>
    %cst_50 = arith.constant dense<0.000000e+00> : vector<2x128xf32>
    %169 = tpu.matmul %146, %0, %cst_50 {dimension_numbers = #tpu.dot_dimension_numbers<[1], [0], [0], [1], [0, 0, 1, 1], [], []>} : vector<2x32xf32>, vector<32x128xf32>, vector<2x128xf32> -> vector<2x128xf32>
    %170 = arith.addf %168, %169 : vector<2x128xf32>
    %171 = arith.negf %170 : vector<2x128xf32>
    %172 = math.exp %171 : vector<2x128xf32>
    %cst_51 = arith.constant 1.000000e+00 : f32
    %173 = vector.broadcast %cst_51 : f32 to vector<2x128xf32>
    %174 = arith.addf %173, %172 : vector<2x128xf32>
    %175 = arith.divf %173, %174 : vector<2x128xf32>
    %176 = math.tanh %170 : vector<2x128xf32>
    %177 = vector.extract_strided_slice %175 {offsets = [0, 0], sizes = [2, 32], strides = [1, 1]} : vector<2x128xf32> to vector<2x32xf32>
    %178 = vector.extract_strided_slice %175 {offsets = [0, 32], sizes = [2, 32], strides = [1, 1]} : vector<2x128xf32> to vector<2x32xf32>
    %179 = vector.extract_strided_slice %176 {offsets = [0, 64], sizes = [2, 32], strides = [1, 1]} : vector<2x128xf32> to vector<2x32xf32>
    %180 = vector.extract_strided_slice %175 {offsets = [0, 96], sizes = [2, 32], strides = [1, 1]} : vector<2x128xf32> to vector<2x32xf32>
    %181 = arith.mulf %178, %144 : vector<2x32xf32>
    %182 = arith.mulf %177, %179 : vector<2x32xf32>
    %183 = arith.addf %181, %182 : vector<2x32xf32>
    %184 = math.tanh %183 : vector<2x32xf32>
    %185 = arith.mulf %180, %184 : vector<2x32xf32>
    %186 = tpu.concatenate %185, %165 in 1 : vector<2x32xf32>, vector<2x32xf32> -> vector<2x64xf32>
    %cst_52 = arith.constant dense<0.000000e+00> : vector<2x128xf32>
    %187 = tpu.matmul %186, %1, %cst_52 {dimension_numbers = #tpu.dot_dimension_numbers<[1], [0], [0], [1], [0, 0, 1, 1], [], []>} : vector<2x64xf32>, vector<64x128xf32>, vector<2x128xf32> -> vector<2x128xf32>
    %188 = vector.broadcast %2 : vector<1x128xf32> to vector<2x128xf32>
    %189 = arith.addf %187, %188 : vector<2x128xf32>
    %190 = arith.negf %189 : vector<2x128xf32>
    %191 = math.exp %190 : vector<2x128xf32>
    %cst_53 = arith.constant 1.000000e+00 : f32
    %192 = vector.broadcast %cst_53 : f32 to vector<2x128xf32>
    %193 = arith.addf %192, %191 : vector<2x128xf32>
    %194 = arith.divf %192, %193 : vector<2x128xf32>
    %195 = math.tanh %189 : vector<2x128xf32>
    %196 = vector.extract_strided_slice %194 {offsets = [0, 0], sizes = [2, 32], strides = [1, 1]} : vector<2x128xf32> to vector<2x32xf32>
    %197 = vector.extract_strided_slice %194 {offsets = [0, 32], sizes = [2, 32], strides = [1, 1]} : vector<2x128xf32> to vector<2x32xf32>
    %198 = vector.extract_strided_slice %195 {offsets = [0, 64], sizes = [2, 32], strides = [1, 1]} : vector<2x128xf32> to vector<2x32xf32>
    %199 = vector.extract_strided_slice %194 {offsets = [0, 96], sizes = [2, 32], strides = [1, 1]} : vector<2x128xf32> to vector<2x32xf32>
    %200 = arith.mulf %197, %163 : vector<2x32xf32>
    %201 = arith.mulf %196, %198 : vector<2x32xf32>
    %202 = arith.addf %200, %201 : vector<2x32xf32>
    %203 = math.tanh %202 : vector<2x32xf32>
    %204 = arith.mulf %199, %203 : vector<2x32xf32>
    %c8 = arith.constant 8 : index
    %c0_54 = arith.constant 0 : index
    %205 = vector.load %arg11[%c8, %c0_54] : memref<16x32xf32, #tpu.memory_space<vmem>>, vector<2x32xf32>
    tpu.vector_store %arg11[%c8, %c0_54], %204 {strides = array<i32>} : memref<16x32xf32, #tpu.memory_space<vmem>>, vector<2x32xf32>,
    %c5 = arith.constant 5 : index
    %c0_55 = arith.constant 0 : index
    %c0_56 = arith.constant 0 : index
    %206 = vector.load %arg0[%c5, %c0_55, %c0_56] : memref<8x2x128xf32, #tpu.memory_space<vmem>>, vector<1x2x128xf32>
    %207 = vector.shape_cast %206 : vector<1x2x128xf32> to vector<2x128xf32>
    %cst_57 = arith.constant dense<0.000000e+00> : vector<2x128xf32>
    %208 = tpu.matmul %185, %0, %cst_57 {dimension_numbers = #tpu.dot_dimension_numbers<[1], [0], [0], [1], [0, 0, 1, 1], [], []>} : vector<2x32xf32>, vector<32x128xf32>, vector<2x128xf32> -> vector<2x128xf32>
    %209 = arith.addf %207, %208 : vector<2x128xf32>
    %210 = arith.negf %209 : vector<2x128xf32>
    %211 = math.exp %210 : vector<2x128xf32>
    %cst_58 = arith.constant 1.000000e+00 : f32
    %212 = vector.broadcast %cst_58 : f32 to vector<2x128xf32>
    %213 = arith.addf %212, %211 : vector<2x128xf32>
    %214 = arith.divf %212, %213 : vector<2x128xf32>
    %215 = math.tanh %209 : vector<2x128xf32>
    %216 = vector.extract_strided_slice %214 {offsets = [0, 0], sizes = [2, 32], strides = [1, 1]} : vector<2x128xf32> to vector<2x32xf32>
    %217 = vector.extract_strided_slice %214 {offsets = [0, 32], sizes = [2, 32], strides = [1, 1]} : vector<2x128xf32> to vector<2x32xf32>
    %218 = vector.extract_strided_slice %215 {offsets = [0, 64], sizes = [2, 32], strides = [1, 1]} : vector<2x128xf32> to vector<2x32xf32>
    %219 = vector.extract_strided_slice %214 {offsets = [0, 96], sizes = [2, 32], strides = [1, 1]} : vector<2x128xf32> to vector<2x32xf32>
    %220 = arith.mulf %217, %183 : vector<2x32xf32>
    %221 = arith.mulf %216, %218 : vector<2x32xf32>
    %222 = arith.addf %220, %221 : vector<2x32xf32>
    %223 = math.tanh %222 : vector<2x32xf32>
    %224 = arith.mulf %219, %223 : vector<2x32xf32>
    %225 = tpu.concatenate %224, %204 in 1 : vector<2x32xf32>, vector<2x32xf32> -> vector<2x64xf32>
    %cst_59 = arith.constant dense<0.000000e+00> : vector<2x128xf32>
    %226 = tpu.matmul %225, %1, %cst_59 {dimension_numbers = #tpu.dot_dimension_numbers<[1], [0], [0], [1], [0, 0, 1, 1], [], []>} : vector<2x64xf32>, vector<64x128xf32>, vector<2x128xf32> -> vector<2x128xf32>
    %227 = vector.broadcast %2 : vector<1x128xf32> to vector<2x128xf32>
    %228 = arith.addf %226, %227 : vector<2x128xf32>
    %229 = arith.negf %228 : vector<2x128xf32>
    %230 = math.exp %229 : vector<2x128xf32>
    %cst_60 = arith.constant 1.000000e+00 : f32
    %231 = vector.broadcast %cst_60 : f32 to vector<2x128xf32>
    %232 = arith.addf %231, %230 : vector<2x128xf32>
    %233 = arith.divf %231, %232 : vector<2x128xf32>
    %234 = math.tanh %228 : vector<2x128xf32>
    %235 = vector.extract_strided_slice %233 {offsets = [0, 0], sizes = [2, 32], strides = [1, 1]} : vector<2x128xf32> to vector<2x32xf32>
    %236 = vector.extract_strided_slice %233 {offsets = [0, 32], sizes = [2, 32], strides = [1, 1]} : vector<2x128xf32> to vector<2x32xf32>
    %237 = vector.extract_strided_slice %234 {offsets = [0, 64], sizes = [2, 32], strides = [1, 1]} : vector<2x128xf32> to vector<2x32xf32>
    %238 = vector.extract_strided_slice %233 {offsets = [0, 96], sizes = [2, 32], strides = [1, 1]} : vector<2x128xf32> to vector<2x32xf32>
    %239 = arith.mulf %236, %202 : vector<2x32xf32>
    %240 = arith.mulf %235, %237 : vector<2x32xf32>
    %241 = arith.addf %239, %240 : vector<2x32xf32>
    %242 = math.tanh %241 : vector<2x32xf32>
    %243 = arith.mulf %238, %242 : vector<2x32xf32>
    %c10 = arith.constant 10 : index
    %c0_61 = arith.constant 0 : index
    %244 = vector.load %arg11[%c10, %c0_61] : memref<16x32xf32, #tpu.memory_space<vmem>>, vector<2x32xf32>
    tpu.vector_store %arg11[%c10, %c0_61], %243 {strides = array<i32>} : memref<16x32xf32, #tpu.memory_space<vmem>>, vector<2x32xf32>,
    %c6_62 = arith.constant 6 : index
    %c0_63 = arith.constant 0 : index
    %c0_64 = arith.constant 0 : index
    %245 = vector.load %arg0[%c6_62, %c0_63, %c0_64] : memref<8x2x128xf32, #tpu.memory_space<vmem>>, vector<1x2x128xf32>
    %246 = vector.shape_cast %245 : vector<1x2x128xf32> to vector<2x128xf32>
    %cst_65 = arith.constant dense<0.000000e+00> : vector<2x128xf32>
    %247 = tpu.matmul %224, %0, %cst_65 {dimension_numbers = #tpu.dot_dimension_numbers<[1], [0], [0], [1], [0, 0, 1, 1], [], []>} : vector<2x32xf32>, vector<32x128xf32>, vector<2x128xf32> -> vector<2x128xf32>
    %248 = arith.addf %246, %247 : vector<2x128xf32>
    %249 = arith.negf %248 : vector<2x128xf32>
    %250 = math.exp %249 : vector<2x128xf32>
    %cst_66 = arith.constant 1.000000e+00 : f32
    %251 = vector.broadcast %cst_66 : f32 to vector<2x128xf32>
    %252 = arith.addf %251, %250 : vector<2x128xf32>
    %253 = arith.divf %251, %252 : vector<2x128xf32>
    %254 = math.tanh %248 : vector<2x128xf32>
    %255 = vector.extract_strided_slice %253 {offsets = [0, 0], sizes = [2, 32], strides = [1, 1]} : vector<2x128xf32> to vector<2x32xf32>
    %256 = vector.extract_strided_slice %253 {offsets = [0, 32], sizes = [2, 32], strides = [1, 1]} : vector<2x128xf32> to vector<2x32xf32>
    %257 = vector.extract_strided_slice %254 {offsets = [0, 64], sizes = [2, 32], strides = [1, 1]} : vector<2x128xf32> to vector<2x32xf32>
    %258 = vector.extract_strided_slice %253 {offsets = [0, 96], sizes = [2, 32], strides = [1, 1]} : vector<2x128xf32> to vector<2x32xf32>
    %259 = arith.mulf %256, %222 : vector<2x32xf32>
    %260 = arith.mulf %255, %257 : vector<2x32xf32>
    %261 = arith.addf %259, %260 : vector<2x32xf32>
    %262 = math.tanh %261 : vector<2x32xf32>
    %263 = arith.mulf %258, %262 : vector<2x32xf32>
    %264 = tpu.concatenate %263, %243 in 1 : vector<2x32xf32>, vector<2x32xf32> -> vector<2x64xf32>
    %cst_67 = arith.constant dense<0.000000e+00> : vector<2x128xf32>
    %265 = tpu.matmul %264, %1, %cst_67 {dimension_numbers = #tpu.dot_dimension_numbers<[1], [0], [0], [1], [0, 0, 1, 1], [], []>} : vector<2x64xf32>, vector<64x128xf32>, vector<2x128xf32> -> vector<2x128xf32>
    %266 = vector.broadcast %2 : vector<1x128xf32> to vector<2x128xf32>
    %267 = arith.addf %265, %266 : vector<2x128xf32>
    %268 = arith.negf %267 : vector<2x128xf32>
    %269 = math.exp %268 : vector<2x128xf32>
    %cst_68 = arith.constant 1.000000e+00 : f32
    %270 = vector.broadcast %cst_68 : f32 to vector<2x128xf32>
    %271 = arith.addf %270, %269 : vector<2x128xf32>
    %272 = arith.divf %270, %271 : vector<2x128xf32>
    %273 = math.tanh %267 : vector<2x128xf32>
    %274 = vector.extract_strided_slice %272 {offsets = [0, 0], sizes = [2, 32], strides = [1, 1]} : vector<2x128xf32> to vector<2x32xf32>
    %275 = vector.extract_strided_slice %272 {offsets = [0, 32], sizes = [2, 32], strides = [1, 1]} : vector<2x128xf32> to vector<2x32xf32>
    %276 = vector.extract_strided_slice %273 {offsets = [0, 64], sizes = [2, 32], strides = [1, 1]} : vector<2x128xf32> to vector<2x32xf32>
    %277 = vector.extract_strided_slice %272 {offsets = [0, 96], sizes = [2, 32], strides = [1, 1]} : vector<2x128xf32> to vector<2x32xf32>
    %278 = arith.mulf %275, %241 : vector<2x32xf32>
    %279 = arith.mulf %274, %276 : vector<2x32xf32>
    %280 = arith.addf %278, %279 : vector<2x32xf32>
    %281 = math.tanh %280 : vector<2x32xf32>
    %282 = arith.mulf %277, %281 : vector<2x32xf32>
    %c12 = arith.constant 12 : index
    %c0_69 = arith.constant 0 : index
    %283 = vector.load %arg11[%c12, %c0_69] : memref<16x32xf32, #tpu.memory_space<vmem>>, vector<2x32xf32>
    tpu.vector_store %arg11[%c12, %c0_69], %282 {strides = array<i32>} : memref<16x32xf32, #tpu.memory_space<vmem>>, vector<2x32xf32>,
    %c7 = arith.constant 7 : index
    %c0_70 = arith.constant 0 : index
    %c0_71 = arith.constant 0 : index
    %284 = vector.load %arg0[%c7, %c0_70, %c0_71] : memref<8x2x128xf32, #tpu.memory_space<vmem>>, vector<1x2x128xf32>
    %285 = vector.shape_cast %284 : vector<1x2x128xf32> to vector<2x128xf32>
    %cst_72 = arith.constant dense<0.000000e+00> : vector<2x128xf32>
    %286 = tpu.matmul %263, %0, %cst_72 {dimension_numbers = #tpu.dot_dimension_numbers<[1], [0], [0], [1], [0, 0, 1, 1], [], []>} : vector<2x32xf32>, vector<32x128xf32>, vector<2x128xf32> -> vector<2x128xf32>
    %287 = arith.addf %285, %286 : vector<2x128xf32>
    %288 = arith.negf %287 : vector<2x128xf32>
    %289 = math.exp %288 : vector<2x128xf32>
    %cst_73 = arith.constant 1.000000e+00 : f32
    %290 = vector.broadcast %cst_73 : f32 to vector<2x128xf32>
    %291 = arith.addf %290, %289 : vector<2x128xf32>
    %292 = arith.divf %290, %291 : vector<2x128xf32>
    %293 = math.tanh %287 : vector<2x128xf32>
    %294 = vector.extract_strided_slice %292 {offsets = [0, 0], sizes = [2, 32], strides = [1, 1]} : vector<2x128xf32> to vector<2x32xf32>
    %295 = vector.extract_strided_slice %292 {offsets = [0, 32], sizes = [2, 32], strides = [1, 1]} : vector<2x128xf32> to vector<2x32xf32>
    %296 = vector.extract_strided_slice %293 {offsets = [0, 64], sizes = [2, 32], strides = [1, 1]} : vector<2x128xf32> to vector<2x32xf32>
    %297 = vector.extract_strided_slice %292 {offsets = [0, 96], sizes = [2, 32], strides = [1, 1]} : vector<2x128xf32> to vector<2x32xf32>
    %298 = arith.mulf %295, %261 : vector<2x32xf32>
    %299 = arith.mulf %294, %296 : vector<2x32xf32>
    %300 = arith.addf %298, %299 : vector<2x32xf32>
    %301 = math.tanh %300 : vector<2x32xf32>
    %302 = arith.mulf %297, %301 : vector<2x32xf32>
    %303 = tpu.concatenate %302, %282 in 1 : vector<2x32xf32>, vector<2x32xf32> -> vector<2x64xf32>
    %cst_74 = arith.constant dense<0.000000e+00> : vector<2x128xf32>
    %304 = tpu.matmul %303, %1, %cst_74 {dimension_numbers = #tpu.dot_dimension_numbers<[1], [0], [0], [1], [0, 0, 1, 1], [], []>} : vector<2x64xf32>, vector<64x128xf32>, vector<2x128xf32> -> vector<2x128xf32>
    %305 = vector.broadcast %2 : vector<1x128xf32> to vector<2x128xf32>
    %306 = arith.addf %304, %305 : vector<2x128xf32>
    %307 = arith.negf %306 : vector<2x128xf32>
    %308 = math.exp %307 : vector<2x128xf32>
    %cst_75 = arith.constant 1.000000e+00 : f32
    %309 = vector.broadcast %cst_75 : f32 to vector<2x128xf32>
    %310 = arith.addf %309, %308 : vector<2x128xf32>
    %311 = arith.divf %309, %310 : vector<2x128xf32>
    %312 = math.tanh %306 : vector<2x128xf32>
    %313 = vector.extract_strided_slice %311 {offsets = [0, 0], sizes = [2, 32], strides = [1, 1]} : vector<2x128xf32> to vector<2x32xf32>
    %314 = vector.extract_strided_slice %311 {offsets = [0, 32], sizes = [2, 32], strides = [1, 1]} : vector<2x128xf32> to vector<2x32xf32>
    %315 = vector.extract_strided_slice %312 {offsets = [0, 64], sizes = [2, 32], strides = [1, 1]} : vector<2x128xf32> to vector<2x32xf32>
    %316 = vector.extract_strided_slice %311 {offsets = [0, 96], sizes = [2, 32], strides = [1, 1]} : vector<2x128xf32> to vector<2x32xf32>
    %317 = arith.mulf %314, %280 : vector<2x32xf32>
    %318 = arith.mulf %313, %315 : vector<2x32xf32>
    %319 = arith.addf %317, %318 : vector<2x32xf32>
    %320 = math.tanh %319 : vector<2x32xf32>
    %321 = arith.mulf %316, %320 : vector<2x32xf32>
    %c14 = arith.constant 14 : index
    %c0_76 = arith.constant 0 : index
    %322 = vector.load %arg11[%c14, %c0_76] : memref<16x32xf32, #tpu.memory_space<vmem>>, vector<2x32xf32>
    tpu.vector_store %arg11[%c14, %c0_76], %321 {strides = array<i32>} : memref<16x32xf32, #tpu.memory_space<vmem>>, vector<2x32xf32>,
    %c0_77 = arith.constant 0 : index
    %c0_78 = arith.constant 0 : index
    %c0_79 = arith.constant 0 : index
    %323 = vector.load %arg9[%c0_77, %c0_78, %c0_79] : memref<2x2x32xf32, #tpu.memory_space<vmem>>, vector<1x2x32xf32>
    %324 = vector.shape_cast %323 : vector<1x2x32xf32> to vector<2x32xf32>
    %325 = vector.shape_cast %302 : vector<2x32xf32> to vector<1x2x32xf32>
    tpu.vector_store %arg9[%c0_77, %c0_78, %c0_79], %325 {strides = array<i32>} : memref<2x2x32xf32, #tpu.memory_space<vmem>>, vector<1x2x32xf32>,
    %c1_80 = arith.constant 1 : index
    %c0_81 = arith.constant 0 : index
    %c0_82 = arith.constant 0 : index
    %326 = vector.load %arg9[%c1_80, %c0_81, %c0_82] : memref<2x2x32xf32, #tpu.memory_space<vmem>>, vector<1x2x32xf32>
    %327 = vector.shape_cast %326 : vector<1x2x32xf32> to vector<2x32xf32>
    %328 = vector.shape_cast %321 : vector<2x32xf32> to vector<1x2x32xf32>
    tpu.vector_store %arg9[%c1_80, %c0_81, %c0_82], %328 {strides = array<i32>} : memref<2x2x32xf32, #tpu.memory_space<vmem>>, vector<1x2x32xf32>,
    %c0_83 = arith.constant 0 : index
    %c0_84 = arith.constant 0 : index
    %c0_85 = arith.constant 0 : index
    %329 = vector.load %arg10[%c0_83, %c0_84, %c0_85] : memref<2x2x32xf32, #tpu.memory_space<vmem>>, vector<1x2x32xf32>
    %330 = vector.shape_cast %329 : vector<1x2x32xf32> to vector<2x32xf32>
    %331 = vector.shape_cast %300 : vector<2x32xf32> to vector<1x2x32xf32>
    tpu.vector_store %arg10[%c0_83, %c0_84, %c0_85], %331 {strides = array<i32>} : memref<2x2x32xf32, #tpu.memory_space<vmem>>, vector<1x2x32xf32>,
    %c1_86 = arith.constant 1 : index
    %c0_87 = arith.constant 0 : index
    %c0_88 = arith.constant 0 : index
    %332 = vector.load %arg10[%c1_86, %c0_87, %c0_88] : memref<2x2x32xf32, #tpu.memory_space<vmem>>, vector<1x2x32xf32>
    %333 = vector.shape_cast %332 : vector<1x2x32xf32> to vector<2x32xf32>
    %334 = vector.shape_cast %319 : vector<2x32xf32> to vector<1x2x32xf32>
    tpu.vector_store %arg10[%c1_86, %c0_87, %c0_88], %334 {strides = array<i32>} : memref<2x2x32xf32, #tpu.memory_space<vmem>>, vector<1x2x32xf32>,
    %c0_89 = arith.constant 0 : index
    %c0_90 = arith.constant 0 : index
    %335 = vector.load %arg11[%c0_89, %c0_90] : memref<16x32xf32, #tpu.memory_space<vmem>>, vector<16x32xf32>
    %c0_91 = arith.constant 0 : index
    %c0_92 = arith.constant 0 : index
    %336 = vector.load %arg6[%c0_91, %c0_92] : memref<32x128xf32, #tpu.memory_space<vmem>>, vector<32x128xf32>
    %cst_93 = arith.constant dense<0.000000e+00> : vector<16x128xf32>
    %337 = tpu.matmul %335, %336, %cst_93 {dimension_numbers = #tpu.dot_dimension_numbers<[1], [0], [0], [1], [0, 0, 1, 1], [], []>} : vector<16x32xf32>, vector<32x128xf32>, vector<16x128xf32> -> vector<16x128xf32>
    %c0_94 = arith.constant 0 : index
    %c0_95 = arith.constant 0 : index
    %338 = vector.load %arg7[%c0_94, %c0_95] : memref<1x128xf32, #tpu.memory_space<vmem>>, vector<1x128xf32>
    %339 = vector.broadcast %338 : vector<1x128xf32> to vector<16x128xf32>
    %340 = arith.addf %337, %339 : vector<16x128xf32>
    %341 = arith.negf %340 : vector<16x128xf32>
    %342 = math.exp %341 : vector<16x128xf32>
    %cst_96 = arith.constant 1.000000e+00 : f32
    %343 = vector.broadcast %cst_96 : f32 to vector<16x128xf32>
    %344 = arith.addf %343, %342 : vector<16x128xf32>
    %345 = arith.divf %343, %344 : vector<16x128xf32>
    %c0_97 = arith.constant 0 : index
    %c0_98 = arith.constant 0 : index
    %346 = vector.load %arg8[%c0_97, %c0_98] : memref<16x128xf32, #tpu.memory_space<vmem>>, vector<16x128xf32>
    tpu.vector_store %arg8[%c0_97, %c0_98], %345 {strides = array<i32>} : memref<16x128xf32, #tpu.memory_space<vmem>>, vector<16x128xf32>,
    return
  }
}

</mosaic_0001>

<bundles_post_ra>
// kernel: tpu_custom_call.1
= control target key start
LH: loop header
LB: loop body
LE: loop exit
PB: predicated region body
PF: predicated region fallthrough
CT: control target
= control target key end

     0   :  { %16 = vsyncpa [#allocation4], 0  ;;  %s3333_s0 = inlined_call_operand.hbm [shape: f32[8,2,128], index: 0, kind: input, shape index: {}]   ;;  %s3334_s1 = inlined_call_operand.hbm [shape: f32[2,2,32], index: 1, kind: input, shape index: {}]   ;;  %s3335_s2 = inlined_call_operand.hbm [shape: f32[2,2,32], index: 2, kind: input, shape index: {}]   ;;  %s3336_s3 = inlined_call_operand.hbm [shape: f32[32,128], index: 3, kind: input, shape index: {}]   ;;  %s3337_s4 = inlined_call_operand.hbm [shape: f32[64,128], index: 4, kind: input, shape index: {}]   ;;  %s3338_s5 = inlined_call_operand.vmem [shape: f32[1,128], index: 5, kind: input, shape index: {}]   ;;  %s3339_s6 = inlined_call_operand.hbm [shape: f32[32,128], index: 6, kind: input, shape index: {}]   ;;  %s3340_s7 = inlined_call_operand.vmem [shape: f32[1,128], index: 7, kind: input, shape index: {}]   ;;  %s3341_s8 = inlined_call_operand.hbm [shape: f32[16,128], index: 8, kind: output, shape index: {0}]   ;;  %s3342_s9 = inlined_call_operand.hbm [shape: f32[2,2,32], index: 9, kind: output, shape index: {1}]   ;;  %s3343_s10 = inlined_call_operand.hbm [shape: f32[2,2,32], index: 10, kind: output, shape index: {2}]  }
   0x1   :  { %17 = vsyncpa [#allocation7], 0 }
   0x2   :  { %18 = vsyncpa [#allocation10], 0 }
   0x3   :  { %19 = vsyncpa [#allocation13], 0 }
   0x4   :  { %20 = vsyncpa [#allocation5], 0 }
   0x5   :  { %21 = vsyncpa [#allocation16], 0  ;;  %s2758_s13 = smov [#allocation6]   ;;  %s2759_s15 = smov [#allocation9]  }
   0x6   :  { %s39_s14 = sshll.u32 %s2758_s13, 4  ;;  %s63_s16 = sshll.u32 %s2759_s15, 4  ;;  %s40_s14 = int_to_ptr.vmem [resolvable:$true] %s39_s14  ;;  %s64_s16 = int_to_ptr.vmem [resolvable:$true] %s63_s16 }
   0x7   :  { %s2574_s17 = scalar_lea.vmem %s40_s14, 64  ;;  %p2579_p1 = scmp.lt.s32.totalorder %s40_s14, %s40_s14 }
   0x8   :  { %p2575_p0 = scmp.ne.s32.totalorder %s40_s14, %s2574_s17  ;;  %p2580_p2 = scmp.lt.s32.totalorder %s2574_s17, %s2574_s17 }
   0xa   :  { %p2581_p3 = por %p2580_p2, %p2579_p1 }
   0xc   :  { %p2582_p4 = pnand %p2581_p3, %p2575_p0 }
   0xe   :  { %2585 = shalt.err (!%p2582_p4)
}
   0xf   :  { %s2760_s18 = smov 32   ;;  %s2761_s19 = smov 2  }
  0x10   :  { %45 = dma.hbm_to_vmem [thread:$0]  %s3334_s1, 64, %s40_s14, [#allocation7], %s2760_s18, %s2760_s18, %s2761_s19  }
  0x11   :  { %s2594_s22 = scalar_lea.vmem %s64_s16, 512  ;;  %p2599_p6 = scmp.lt.s32.totalorder %s64_s16, %s64_s16 }
  0x12   :  { %p2595_p5 = scmp.ne.s32.totalorder %s64_s16, %s2594_s22  ;;  %p2600_p7 = scmp.lt.s32.totalorder %s2594_s22, %s2594_s22 }
  0x14   :  { %p2601_p8 = por %p2600_p7, %p2599_p6 }
  0x16   :  { %p2602_p9 = pnand %p2601_p8, %p2595_p5 }
  0x18   :  { %2605 = shalt.err (!%p2602_p9)
}
  0x19   :  { %s2762_s23 = smov 128   ;;  %s2763_s24 = smov 8  }
  0x1a   :  { %69 = dma.hbm_to_vmem [thread:$0]  %s3336_s3, 512, %s64_s16, [#allocation10], %s2762_s23, %s2762_s23, %s2763_s24  }
  0x1b   :  { %s2764_s27 = smov [#allocation3]   ;;  %s2765_s29 = smov [#allocation8]  }
  0x1c   :  { %s27_s28 = sshll.u32 %s2764_s27, 4  ;;  %s51_s1 = sshll.u32 %s2765_s29, 4  ;;  %s28_s28 = int_to_ptr.vmem [resolvable:$true] %s27_s28  ;;  %s52_s1 = int_to_ptr.vmem [resolvable:$true] %s51_s1 }
  0x1d   :  { %s2614_s30 = scalar_lea.vmem %s28_s28, 256  ;;  %p2619_p11 = scmp.lt.s32.totalorder %s28_s28, %s28_s28 }
  0x1e   :  { %p2615_p10 = scmp.ne.s32.totalorder %s28_s28, %s2614_s30  ;;  %p2620_p12 = scmp.lt.s32.totalorder %s2614_s30, %s2614_s30 }
  0x20   :  { %p2621_p13 = por %p2620_p12, %p2619_p11 }
  0x22   :  { %p2622_p0 = pnand %p2621_p13, %p2615_p10 }
  0x24   :  { %2625 = shalt.err (!%p2622_p0)
}
  0x25   :  { %33 = dma.hbm_to_vmem [thread:$0]  %s3333_s0, 256, %s28_s28, [#allocation4], %s2760_s18, %s2760_s18, %s2761_s19  }
  0x26   :  { %s2634_s3 = scalar_lea.vmem %s52_s1, 64  ;;  %p2639_p2 = scmp.lt.s32.totalorder %s52_s1, %s52_s1 }
  0x27   :  { %p2635_p1 = scmp.ne.s32.totalorder %s52_s1, %s2634_s3  ;;  %p2640_p3 = scmp.lt.s32.totalorder %s2634_s3, %s2634_s3 }
  0x29   :  { %p2641_p4 = por %p2640_p3, %p2639_p2 }
  0x2b   :  { %p2642_p5 = pnand %p2641_p4, %p2635_p1 }
  0x2d   :  { %2645 = shalt.err (!%p2642_p5)
}
  0x2e   :  { %57 = dma.hbm_to_vmem [thread:$0]  %s3335_s2, 64, %s52_s1, [#allocation7], %s2760_s18, %s2760_s18, %s2761_s19  }
  0x2f   :  { %s2766_s15 = smov [#allocation11]   ;;  %s2767_s17 = smov [#allocation12]  }
  0x30   :  { %s75_s16 = sshll.u32 %s2766_s15, 4  ;;  %s89_s20 = sshll.u32 %s2767_s17, 4  ;;  %s76_s16 = int_to_ptr.vmem [resolvable:$true] %s75_s16  ;;  %s90_s20 = int_to_ptr.vmem [resolvable:$true] %s89_s20 }
  0x31   :  { %s2654_s0 = scalar_lea.vmem %s76_s16, 1024  ;;  %p2659_p7 = scmp.lt.s32.totalorder %s76_s16, %s76_s16 }
  0x32   :  { %p2655_p6 = scmp.ne.s32.totalorder %s76_s16, %s2654_s0  ;;  %p2660_p8 = scmp.lt.s32.totalorder %s2654_s0, %s2654_s0 }
  0x34   :  { %p2661_p9 = por %p2660_p8, %p2659_p7 }
  0x36   :  { %p2662_p10 = pnand %p2661_p9, %p2655_p6 }
  0x38   :  { %2665 = shalt.err (!%p2662_p10)
}
  0x39   :  { %81 = dma.hbm_to_vmem [thread:$0]  %s3337_s4, 1024, %s76_s16, [#allocation10], %s2762_s23, %s2762_s23, %s2763_s24  }
  0x3a   :  { %s2674_s2 = scalar_lea.vmem %s90_s20, 512  ;;  %p2679_p12 = scmp.lt.s32.totalorder %s90_s20, %s90_s20 }
  0x3b   :  { %p2675_p11 = scmp.ne.s32.totalorder %s90_s20, %s2674_s2  ;;  %p2680_p13 = scmp.lt.s32.totalorder %s2674_s2, %s2674_s2 }
  0x3d   :  { %p2681_p0 = por %p2680_p13, %p2679_p12 }
  0x3f   :  { %p2682_p1 = pnand %p2681_p0, %p2675_p11 }
  0x41   :  { %2685 = shalt.err (!%p2682_p1)
}
  0x42   :  { %95 = dma.hbm_to_vmem [thread:$0]  %s3339_s6, 512, %s90_s20, [#allocation13], %s2762_s23, %s2762_s23, %s2763_s24  }
  0x43   :  { %2746 = dma.done.wait [#allocation4], 256  }
  0x44   :  { %2747 = vsyncadd [#allocation4], 4294967040 }
  0x45   :  { %2748 = dma.done.wait [#allocation7], 128  }
  0x46   :  { %2749 = vsyncadd [#allocation7], 4294967168 }
  0x47   :  { %2750 = dma.done.wait [#allocation10], 1536  }
  0x48   :  { %2751 = vsyncadd [#allocation10], 4294965760 }
  0x49   :  { %2752 = dma.done.wait [#allocation13], 512  }
  0x4a   :  { %2753 = vsyncadd [#allocation13], 4294966784  ;;  %v2768_v0 = vmov 0.0   ;;  %vm2769_vm0 = vmmov 0   ;;  %v2872_v1 = vld [vmem:[#allocation9 + $0x18] sm:$0xff]  ;;  %v2874_v2 = vld [vmem:[#allocation9 + $0x10] sm:$0xff] }
  0x4b   :  { %2154 = vmatprep.subr.mxu0 %v2768_v0  ;;  %2162 = vmatprep.mubr.msk.f32.mxu0 %vm2769_vm0, %v2768_v0  ;;  %v2878_v3 = vld [vmem:[#allocation9 + $0x8] sm:$0xff]  ;;  %v2882_v4 = vld [vmem:[#allocation9] sm:$0xff]  ;;  %v129_v5 = vld [vmem:[#allocation6] sm:$0x3]  ;;  %vm136_vm1 = vcmask 261120   ;;  %s2770_s4 = smov 64  }
  0x4c   :  { %2165 = vmatprep.subr.mxu1 %v2768_v0  ;;  %2181 = vmatprep.mubr.msk.f32.mxu1 %vm2769_vm0, %v2768_v0  ;;  %v135_v6 = vld [vmem:[#allocation3] sm:$0x3]  ;;  %v132_v11 = vld [vmem:[#allocation8] sm:$0x3]  ;;  %v2907_v23 = vld [vmem:[#allocation11 + $0x30] sm:$0xff]  ;;  %vm254_vm2 = vcmask 523264  }
  0x4d   :  { %2155 = vmatpush3.msra.mxu0 %v2872_v1  ;;  %v2905_v22 = vld [vmem:[#allocation11 + $0x38] sm:$0xff]  ;;  %v2911_v24 = vld [vmem:[#allocation11 + $0x28] sm:$0xff]  ;;  %v2915_v25 = vld [vmem:[#allocation11 + $0x20] sm:$0xff]  ;;  %vm360_vm3 = vcmask 254976   ;;  %s2772_s1 = smov [#allocation15]  }
  0x4e   :  { %2156 = vmatprep.subr.mxu0 %v2768_v0  ;;  %2166 = vmatpush3.msra.mxu1 %v2905_v22  ;;  %v2919_v26 = vld [vmem:[#allocation11 + $0x18] sm:$0xff]  ;;  %v2923_v27 = vld [vmem:[#allocation11 + $0x10] sm:$0xff]  ;;  %v2927_v29 = vld [vmem:[#allocation11 + $0x8] sm:$0xff]  ;;  %s1964_s30 = sshll.u32 %s2772_s1, 4  ;;  %s1965_s30 = int_to_ptr.vmem [resolvable:$true] %s1964_s30 }
  0x4f   :  { %2157 = vmatpush3.msra.mxu0 %v2874_v2  ;;  %2167 = vmatprep.subr.mxu1 %v2768_v0  ;;  %v131_v30 = vld [vmem:[#allocation6 + $0x2] sm:$0x3]  ;;  %v2935_v31 = vld [vmem:[#allocation11] sm:$0xff]  ;;  %v363_v37 = vld [vmem:[#allocation3 + $0x2] sm:$0x3]  ;;  %s2686_s11 = scalar_lea.vmem %s1965_s30, 64  ;;  %p2691_p3 = scmp.lt.s32.totalorder %s1965_s30, %s1965_s30 }
  0x50   :  { %2158 = vmatprep.subr.mxu0 %v2768_v0  ;;  %2168 = vmatpush3.msra.mxu1 %v2907_v23  ;;  %v2974_v38 = vld [vmem:[%s3338_s5] ss:$0 sm:$0xff]  ;;  %v134_v47 = vld [vmem:[#allocation8 + $0x2] sm:$0x3]  ;;  %p2687_p2 = scmp.ne.s32.totalorder %s1965_s30, %s2686_s11  ;;  %p2692_p4 = scmp.lt.s32.totalorder %s2686_s11, %s2686_s11 }
  0x51   :  { %2159 = vmatpush3.msra.mxu0 %v2878_v3  ;;  %2169 = vmatprep.subr.mxu1 %v2768_v0 }
  0x52   :  { %2160 = vmatprep.subr.mxu0 %v2768_v0  ;;  %2170 = vmatpush3.msra.mxu1 %v2911_v24  ;;  %p2693_p5 = por %p2692_p4, %p2691_p3 }
  0x53   :  { %2161 = vmatpush3.msra.mxu0 %v2882_v4  ;;  %2171 = vmatprep.subr.mxu1 %v2768_v0 }
  0x54   :  { %2163 = vmatmul.mubr.msk.f32.vlgmr.msra.gmra.mxu0 %vm136_vm1, %v129_v5  ;;  %2184 = vmatprep.subr.mxu0 %v2768_v0  ;;  %p2694_p6 = pnand %p2693_p5, %p2687_p2 }
  0x55   :  { %2185 = vmatpush3.msra.mxu0 %v2872_v1  ;;  %2192 = vmatprep.mubr.msk.f32.mxu0 %vm2769_vm0, %v2768_v0 }
  0x56   :  { %2186 = vmatprep.subr.mxu0 %v2768_v0  ;;  %2172 = vmatpush3.msra.mxu1 %v2915_v25 }
  0x57   :  { %2187 = vmatpush3.msra.mxu0 %v2874_v2  ;;  %2173 = vmatprep.subr.mxu1 %v2768_v0 }
  0x58   :  { %2188 = vmatprep.subr.mxu0 %v2768_v0  ;;  %2174 = vmatpush3.msra.mxu1 %v2919_v26 }
  0x59   :  { %2189 = vmatpush3.msra.mxu0 %v2878_v3  ;;  %2175 = vmatprep.subr.mxu1 %v2768_v0 }
  0x5a   :  { %2190 = vmatprep.subr.mxu0 %v2768_v0  ;;  %2176 = vmatpush3.msra.mxu1 %v2923_v27 }
  0x5b   :  { %2191 = vmatpush3.msra.mxu0 %v2882_v4  ;;  %2177 = vmatprep.subr.mxu1 %v2768_v0 }
  0x5c   :  { %2195 = vmatprep.subr.mxu0 %v2768_v0  ;;  %2178 = vmatpush3.msra.mxu1 %v2927_v29 }
  0x5d   :  { %2179 = vmatprep.subr.mxu1 %v2768_v0 }
  0x5e   :  { %2180 = vmatpush3.msra.mxu1 %v2935_v31 }
  0x5f   :  { %2214 = vmatprep.subr.mxu1 %v2768_v0 }
 0x114   :  { %v206_v7 = vpop.f32.mrf.mxu0 }
 0x115   :  { %v210_v8 = vadd.f32 %v206_v7, %v135_v6 }
 0x116   :  { %v2164_v9 = vpop.f32.mrf.mxu0 }
 0x117   :  { %2422 = vtanh.f32 %v210_v8  ;;  %v1999_v12 = vmul.f32 -1.442695, %v210_v8 }
 0x119   :  { %2424 = vpow2.f32 %v1999_v12 }
 0x124   :  { %v2423_v10 = vpop.eup %2422 }
 0x125   :  { %224 = vrot.lane.b32.xlu0 %v2423_v10, %s2770_s4 }
 0x126   :  { %v2425_v13 = vpop.eup %2424 }
 0x127   :  { %v214_v14 = vadd.f32 1.0, %v2425_v13 }
 0x129   :  { %219 = vrot.lane.b32.xlu0 %v132_v11, %s2760_s18  ;;  %2426 = vrcp.f32 %v214_v14 }
 0x136   :  { %v2427_v15 = vpop.eup %2426 }
 0x197   :  { %v225_v16 = vpop.permute.xlu0 %224 }
 0x198   :  { %v227_v17 = vmul.f32 %v2427_v15, %v225_v16 }
 0x19a   :  { %229 = vrot.lane.b32.xlu1 %v227_v17, %s2760_s18  ;;  %v572_v17 = vld [vmem:[#allocation3 + $0x4] sm:$0x3] }
 0x19b   :  { %v220_v18 = vpop.permute.xlu0 %219 }
 0x19c   :  { %v222_v19 = vmul.f32 %v2427_v15, %v220_v18 }
 0x20c   :  { %v230_v20 = vpop.permute.xlu1 %229 }
 0x20d   :  { %v2902_v21 = vadd.f32 %v230_v20, %v222_v19 }
 0x20f   :  { %2428 = vtanh.f32 %v2902_v21 }
 0x21c   :  { %v2429_v28 = vpop.eup %2428 }
 0x21d   :  { %235 = vrot.lane.b32.xlu1 %v2429_v28, %s2770_s4 }
 0x221   :  { %244 = vrot.lane.b32.xlu1 %v131_v30, %s2760_s18 }
 0x28f   :  { %v236_v32 = vpop.permute.xlu1 %235 }
 0x290   :  { %v238_v33 = vmul.f32 %v2427_v15, %v236_v32 }
 0x292   :  { %240 = vrot.lane.b32.xlu0 %v238_v33, %s2760_s18 }
 0x293   :  { %v245_v34 = vpop.permute.xlu1 %244 }
 0x304   :  { %v241_v35 = vpop.permute.xlu0 %240 }
 0x305   :  { %v247_v36 = vsel %vm136_vm1, %v241_v35, %v245_v34  ;;  %2193 = vmatmul.mubr.msk.f32.vlgmr.msra.gmra.mxu0 %vm136_vm1, %v241_v35 }
 0x306   :  { %2182 = vmatmul.mubr.msk.f32.vlgmr.msra.gmra.mxu1 %vm254_vm2, %v247_v36  ;;  %2196 = vmatpush3.msra.mxu0 %v2905_v22 }
 0x307   :  { %2197 = vmatprep.subr.mxu0 %v2768_v0  ;;  %2215 = vmatpush3.msra.mxu1 %v2872_v1 }
 0x308   :  { %2198 = vmatpush3.msra.mxu0 %v2907_v23  ;;  %2216 = vmatprep.subr.mxu1 %v2768_v0 }
 0x309   :  { %2199 = vmatprep.subr.mxu0 %v2768_v0  ;;  %2217 = vmatpush3.msra.mxu1 %v2874_v2 }
 0x30a   :  { %2200 = vmatpush3.msra.mxu0 %v2911_v24  ;;  %2218 = vmatprep.subr.mxu1 %v2768_v0 }
 0x30b   :  { %2201 = vmatprep.subr.mxu0 %v2768_v0  ;;  %2219 = vmatpush3.msra.mxu1 %v2878_v3 }
 0x30c   :  { %2202 = vmatpush3.msra.mxu0 %v2915_v25  ;;  %2220 = vmatprep.subr.mxu1 %v2768_v0 }
 0x30d   :  { %2203 = vmatprep.subr.mxu0 %v2768_v0  ;;  %2221 = vmatpush3.msra.mxu1 %v2882_v4 }
 0x30e   :  { %2204 = vmatpush3.msra.mxu0 %v2919_v26  ;;  %2222 = vmatprep.mubr.msk.f32.mxu1 %vm2769_vm0, %v2768_v0 }
 0x30f   :  { %2205 = vmatprep.subr.mxu0 %v2768_v0  ;;  %2211 = vmatprep.mubr.msk.f32.mxu0 %vm2769_vm0, %v2768_v0 }
 0x310   :  { %2206 = vmatpush3.msra.mxu0 %v2923_v27  ;;  %2225 = vmatprep.subr.mxu1 %v2768_v0 }
 0x311   :  { %2207 = vmatprep.subr.mxu0 %v2768_v0 }
 0x312   :  { %2208 = vmatpush3.msra.mxu0 %v2927_v29 }
 0x313   :  { %2209 = vmatprep.subr.mxu0 %v2768_v0 }
 0x314   :  { %2210 = vmatpush3.msra.mxu0 %v2935_v31 }
 0x315   :  { %2244 = vmatprep.subr.mxu0 %v2768_v0 }
 0x3c5   :  { %v432_v39 = vpop.f32.mrf.mxu0 }
 0x3c6   :  { %v436_v40 = vadd.f32 %v432_v39, %v363_v37  ;;  %v324_v41 = vpop.f32.mrf.mxu1 }
 0x3c7   :  { %v325_v42 = vadd.f32 %v2974_v38, %v324_v41  ;;  %v2194_v43 = vpop.f32.mrf.mxu0 }
 0x3c8   :  { %2430 = vtanh.f32 %v436_v40  ;;  %v2183_v44 = vpop.f32.mrf.mxu1  ;;  %v2004_v48 = vmul.f32 -1.442695, %v436_v40 }
 0x3c9   :  { %2432 = vtanh.f32 %v325_v42  ;;  %v2002_v49 = vmul.f32 -1.442695, %v325_v42 }
 0x3ca   :  { %2434 = vpow2.f32 %v2004_v48 }
 0x3cb   :  { %2436 = vpow2.f32 %v2002_v49 }
 0x3d5   :  { %v2431_v45 = vpop.eup %2430 }
 0x3d6   :  { %v2433_v46 = vpop.eup %2432  ;;  %446 = vrot.lane.b32.xlu1 %v2431_v45, %s2770_s4 }
 0x3d7   :  { %341 = vrot.lane.b32.xlu0 %v2433_v46, %s2770_s4  ;;  %v2435_v50 = vpop.eup %2434 }
 0x3d8   :  { %v2437_v51 = vpop.eup %2436  ;;  %v440_v52 = vadd.f32 1.0, %v2435_v50 }
 0x3d9   :  { %v331_v53 = vadd.f32 1.0, %v2437_v51 }
 0x3da   :  { %2438 = vrcp.f32 %v440_v52 }
 0x3db   :  { %336 = vrot.lane.b32.xlu0 %v134_v47, %s2760_s18  ;;  %2440 = vrcp.f32 %v331_v53 }
 0x3e7   :  { %v2439_v54 = vpop.eup %2438 }
 0x3e8   :  { %v2441_v56 = vpop.eup %2440  ;;  %v444_v61 = vmul.f32 %v2439_v54, %v2902_v21 }
 0x448   :  { %v447_v55 = vpop.permute.xlu1 %446 }
 0x449   :  { %v449_v57 = vmul.f32 %v2439_v54, %v447_v55  ;;  %v342_v58 = vpop.permute.xlu0 %341 }
 0x44a   :  { %v344_v59 = vmul.f32 %v2441_v56, %v342_v58 }
 0x44b   :  { %451 = vrot.lane.b32.xlu0 %v449_v57, %s2760_s18 }
 0x44c   :  { %346 = vrot.lane.b32.xlu1 %v344_v59, %s2760_s18 }
 0x44d   :  { %v337_v60 = vpop.permute.xlu0 %336 }
 0x44e   :  { %v339_v62 = vmul.f32 %v2441_v56, %v337_v60 }
 0x4bd   :  { %v452_v63 = vpop.permute.xlu0 %451 }
 0x4be   :  { %v2983_v5 = vadd.f32 %v452_v63, %v444_v61  ;;  %v347_v6 = vpop.permute.xlu1 %346 }
 0x4bf   :  { %v2985_v7 = vadd.f32 %v347_v6, %v339_v62  ;;  %v781_v62 = vld [vmem:[#allocation3 + $0x6] sm:$0x3] }
 0x4c0   :  { %2442 = vtanh.f32 %v2983_v5 }
 0x4c1   :  { %2444 = vtanh.f32 %v2985_v7 }
 0x4cd   :  { %v2443_v8 = vpop.eup %2442 }
 0x4ce   :  { %v2445_v9 = vpop.eup %2444  ;;  %457 = vrot.lane.b32.xlu0 %v2443_v8, %s2770_s4 }
 0x4cf   :  { %352 = vrot.lane.b32.xlu1 %v2445_v9, %s2770_s4 }
 0x540   :  { %v458_v10 = vpop.permute.xlu0 %457 }
 0x541   :  { %v460_v11 = vmul.f32 %v2439_v54, %v458_v10  ;;  %v353_v12 = vpop.permute.xlu1 %352 }
 0x542   :  { %v2991_v13 = vmul.f32 %v2441_v56, %v353_v12 }
 0x543   :  { %462 = vrot.lane.b32.xlu1 %v460_v11, %s2760_s18 }
 0x544   :  { %465 = vrot.lane.b32.xlu0 %v2991_v13, %s2770_s4 }
 0x5b5   :  { %v463_v14 = vpop.permute.xlu1 %462 }
 0x5b6   :  { %2223 = vmatmul.mubr.msk.f32.vlgmr.msra.gmra.mxu1 %vm136_vm1, %v463_v14  ;;  %v466_v15 = vpop.permute.xlu0 %465 }
 0x5b7   :  { %v468_v16 = vsel %vm136_vm1, %v463_v14, %v466_v15  ;;  %2226 = vmatpush3.msra.mxu1 %v2905_v22  ;;  %2241 = vmatprep.mubr.msk.f32.mxu1 %vm2769_vm0, %v2768_v0 }
 0x5b8   :  { %2212 = vmatmul.mubr.msk.f32.vlgmr.msra.gmra.mxu0 %vm254_vm2, %v468_v16  ;;  %2227 = vmatprep.subr.mxu1 %v2768_v0 }
 0x5b9   :  { %2228 = vmatpush3.msra.mxu1 %v2907_v23  ;;  %2245 = vmatpush3.msra.mxu0 %v2872_v1 }
 0x5ba   :  { %2229 = vmatprep.subr.mxu1 %v2768_v0  ;;  %2246 = vmatprep.subr.mxu0 %v2768_v0 }
 0x5bb   :  { %2230 = vmatpush3.msra.mxu1 %v2911_v24  ;;  %2247 = vmatpush3.msra.mxu0 %v2874_v2 }
 0x5bc   :  { %2231 = vmatprep.subr.mxu1 %v2768_v0  ;;  %2248 = vmatprep.subr.mxu0 %v2768_v0 }
 0x5bd   :  { %2232 = vmatpush3.msra.mxu1 %v2915_v25  ;;  %2249 = vmatpush3.msra.mxu0 %v2878_v3 }
 0x5be   :  { %2233 = vmatprep.subr.mxu1 %v2768_v0  ;;  %2250 = vmatprep.subr.mxu0 %v2768_v0 }
 0x5bf   :  { %2234 = vmatpush3.msra.mxu1 %v2919_v26  ;;  %2251 = vmatpush3.msra.mxu0 %v2882_v4 }
 0x5c0   :  { %2235 = vmatprep.subr.mxu1 %v2768_v0  ;;  %2252 = vmatprep.mubr.msk.f32.mxu0 %vm2769_vm0, %v2768_v0 }
 0x5c1   :  { %2236 = vmatpush3.msra.mxu1 %v2923_v27  ;;  %2255 = vmatprep.subr.mxu0 %v2768_v0 }
 0x5c2   :  { %2237 = vmatprep.subr.mxu1 %v2768_v0 }
 0x5c3   :  { %2238 = vmatpush3.msra.mxu1 %v2927_v29 }
 0x5c4   :  { %2239 = vmatprep.subr.mxu1 %v2768_v0 }
 0x5c5   :  { %2240 = vmatpush3.msra.mxu1 %v2935_v31 }
 0x5c6   :  { %2274 = vmatprep.subr.mxu1 %v2768_v0 }
 0x676   :  { %v641_v18 = vpop.f32.mrf.mxu1 }
 0x677   :  { %v645_v19 = vadd.f32 %v641_v18, %v572_v17 }
 0x678   :  { %v538_v20 = vpop.f32.mrf.mxu0  ;;  %v2224_v21 = vpop.f32.mrf.mxu1 }
 0x679   :  { %2446 = vtanh.f32 %v645_v19  ;;  %v539_v28 = vadd.f32 %v2974_v38, %v538_v20  ;;  %v2008_v34 = vmul.f32 -1.442695, %v645_v19 }
 0x67a   :  { %v2213_v30 = vpop.f32.mrf.mxu0 }
 0x67b   :  { %2448 = vtanh.f32 %v539_v28  ;;  %v2006_v35 = vmul.f32 -1.442695, %v539_v28 }
 0x67c   :  { %2450 = vpow2.f32 %v2008_v34 }
 0x67d   :  { %2452 = vpow2.f32 %v2006_v35 }
 0x686   :  { %v2447_v32 = vpop.eup %2446 }
 0x687   :  { %655 = vrot.lane.b32.xlu0 %v2447_v32, %s2770_s4 }
 0x688   :  { %v2449_v33 = vpop.eup %2448 }
 0x689   :  { %551 = vrot.lane.b32.xlu1 %v2449_v33, %s2770_s4  ;;  %v2451_v36 = vpop.eup %2450 }
 0x68a   :  { %v2453_v37 = vpop.eup %2452  ;;  %v649_v39 = vadd.f32 1.0, %v2451_v36 }
 0x68b   :  { %v545_v40 = vadd.f32 1.0, %v2453_v37 }
 0x68c   :  { %2454 = vrcp.f32 %v649_v39 }
 0x68d   :  { %2456 = vrcp.f32 %v545_v40 }
 0x699   :  { %v2455_v41 = vpop.eup %2454 }
 0x69a   :  { %v2457_v44 = vpop.eup %2456  ;;  %v653_v47 = vmul.f32 %v2455_v41, %v2983_v5 }
 0x69b   :  { %v549_v50 = vmul.f32 %v2457_v44, %v2985_v7 }
 0x6f9   :  { %v656_v42 = vpop.permute.xlu0 %655 }
 0x6fa   :  { %v658_v43 = vmul.f32 %v2455_v41, %v656_v42 }
 0x6fb   :  { %v552_v45 = vpop.permute.xlu1 %551 }
 0x6fc   :  { %660 = vrot.lane.b32.xlu0 %v658_v43, %s2760_s18  ;;  %v554_v46 = vmul.f32 %v2457_v44, %v552_v45 }
 0x6fe   :  { %556 = vrot.lane.b32.xlu1 %v554_v46, %s2760_s18 }
 0x76e   :  { %v661_v48 = vpop.permute.xlu0 %660 }
 0x76f   :  { %v3033_v49 = vadd.f32 %v661_v48, %v653_v47 }
 0x770   :  { %v557_v51 = vpop.permute.xlu1 %556 }
 0x771   :  { %2458 = vtanh.f32 %v3033_v49  ;;  %v3037_v52 = vadd.f32 %v557_v51, %v549_v50 }
 0x773   :  { %2460 = vtanh.f32 %v3037_v52 }
 0x77e   :  { %v2459_v53 = vpop.eup %2458 }
 0x77f   :  { %666 = vrot.lane.b32.xlu0 %v2459_v53, %s2770_s4 }
 0x780   :  { %v2461_v54 = vpop.eup %2460 }
 0x781   :  { %562 = vrot.lane.b32.xlu1 %v2461_v54, %s2770_s4 }
 0x7f1   :  { %v667_v55 = vpop.permute.xlu0 %666 }
 0x7f2   :  { %v669_v56 = vmul.f32 %v2455_v41, %v667_v55 }
 0x7f3   :  { %v563_v57 = vpop.permute.xlu1 %562 }
 0x7f4   :  { %671 = vrot.lane.b32.xlu1 %v669_v56, %s2760_s18  ;;  %v3043_v58 = vmul.f32 %v2457_v44, %v563_v57 }
 0x7f6   :  { %674 = vrot.lane.b32.xlu0 %v3043_v58, %s2770_s4 }
 0x866   :  { %v672_v59 = vpop.permute.xlu1 %671 }
 0x867   :  { %2253 = vmatmul.mubr.msk.f32.vlgmr.msra.gmra.mxu0 %vm136_vm1, %v672_v59 }
 0x868   :  { %2256 = vmatpush3.msra.mxu0 %v2905_v22  ;;  %2271 = vmatprep.mubr.msk.f32.mxu0 %vm2769_vm0, %v2768_v0  ;;  %v675_v60 = vpop.permute.xlu0 %674 }
 0x869   :  { %2257 = vmatprep.subr.mxu0 %v2768_v0  ;;  %v677_v61 = vsel %vm136_vm1, %v672_v59, %v675_v60 }
 0x86a   :  { %2258 = vmatpush3.msra.mxu0 %v2907_v23  ;;  %2242 = vmatmul.mubr.msk.f32.vlgmr.msra.gmra.mxu1 %vm254_vm2, %v677_v61 }
 0x86b   :  { %2259 = vmatprep.subr.mxu0 %v2768_v0  ;;  %2275 = vmatpush3.msra.mxu1 %v2872_v1 }
 0x86c   :  { %2260 = vmatpush3.msra.mxu0 %v2911_v24  ;;  %2276 = vmatprep.subr.mxu1 %v2768_v0 }
 0x86d   :  { %2261 = vmatprep.subr.mxu0 %v2768_v0  ;;  %2277 = vmatpush3.msra.mxu1 %v2874_v2 }
 0x86e   :  { %2262 = vmatpush3.msra.mxu0 %v2915_v25  ;;  %2278 = vmatprep.subr.mxu1 %v2768_v0 }
 0x86f   :  { %2263 = vmatprep.subr.mxu0 %v2768_v0  ;;  %2279 = vmatpush3.msra.mxu1 %v2878_v3 }
 0x870   :  { %2264 = vmatpush3.msra.mxu0 %v2919_v26  ;;  %2280 = vmatprep.subr.mxu1 %v2768_v0 }
 0x871   :  { %2265 = vmatprep.subr.mxu0 %v2768_v0  ;;  %2281 = vmatpush3.msra.mxu1 %v2882_v4 }
 0x872   :  { %2266 = vmatpush3.msra.mxu0 %v2923_v27  ;;  %2282 = vmatprep.mubr.msk.f32.mxu1 %vm2769_vm0, %v2768_v0 }
 0x873   :  { %2267 = vmatprep.subr.mxu0 %v2768_v0  ;;  %2285 = vmatprep.subr.mxu1 %v2768_v0 }
 0x874   :  { %2268 = vmatpush3.msra.mxu0 %v2927_v29 }
 0x875   :  { %2269 = vmatprep.subr.mxu0 %v2768_v0 }
 0x876   :  { %2270 = vmatpush3.msra.mxu0 %v2935_v31 }
 0x877   :  { %2304 = vmatprep.subr.mxu0 %v2768_v0 }
 0x927   :  { %v850_v63 = vpop.f32.mrf.mxu0 }
 0x928   :  { %v854_v5 = vadd.f32 %v850_v63, %v781_v62 }
 0x929   :  { %v2254_v6 = vpop.f32.mrf.mxu0 }
 0x92a   :  { %2462 = vtanh.f32 %v854_v5  ;;  %v747_v7 = vpop.f32.mrf.mxu1  ;;  %v2012_v12 = vmul.f32 -1.442695, %v854_v5 }
 0x92b   :  { %v748_v8 = vadd.f32 %v2974_v38, %v747_v7 }
 0x92c   :  { %v2243_v9 = vpop.f32.mrf.mxu1 }
 0x92d   :  { %2464 = vtanh.f32 %v748_v8  ;;  %v2010_v14 = vmul.f32 -1.442695, %v748_v8 }
 0x92e   :  { %2466 = vpow2.f32 %v2012_v12 }
 0x92f   :  { %2468 = vpow2.f32 %v2010_v14 }
 0x937   :  { %v2463_v10 = vpop.eup %2462 }
 0x938   :  { %864 = vrot.lane.b32.xlu0 %v2463_v10, %s2770_s4 }
 0x93a   :  { %v2465_v11 = vpop.eup %2464 }
 0x93b   :  { %760 = vrot.lane.b32.xlu1 %v2465_v11, %s2770_s4  ;;  %v2467_v15 = vpop.eup %2466 }
 0x93c   :  { %v858_v16 = vadd.f32 1.0, %v2467_v15  ;;  %v2469_v17 = vpop.eup %2468 }
 0x93d   :  { %v754_v18 = vadd.f32 1.0, %v2469_v17 }
 0x93e   :  { %2470 = vrcp.f32 %v858_v16 }
 0x93f   :  { %2472 = vrcp.f32 %v754_v18 }
 0x94b   :  { %v2471_v19 = vpop.eup %2470 }
 0x94c   :  { %v2473_v28 = vpop.eup %2472  ;;  %v862_v33 = vmul.f32 %v2471_v19, %v3033_v49  ;;  %v990_v49 = vld [vmem:[#allocation3 + $0x8] sm:$0x3] }
 0x94d   :  { %v758_v36 = vmul.f32 %v2473_v28, %v3037_v52 }
 0x9aa   :  { %v865_v20 = vpop.permute.xlu0 %864 }
 0x9ab   :  { %v867_v21 = vmul.f32 %v2471_v19, %v865_v20 }
 0x9ad   :  { %869 = vrot.lane.b32.xlu0 %v867_v21, %s2760_s18  ;;  %v761_v30 = vpop.permute.xlu1 %760 }
 0x9ae   :  { %v763_v32 = vmul.f32 %v2473_v28, %v761_v30 }
 0x9b0   :  { %765 = vrot.lane.b32.xlu1 %v763_v32, %s2760_s18 }
 0xa1f   :  { %v870_v34 = vpop.permute.xlu0 %869 }
 0xa20   :  { %v3084_v35 = vadd.f32 %v870_v34, %v862_v33 }
 0xa22   :  { %2474 = vtanh.f32 %v3084_v35  ;;  %v766_v37 = vpop.permute.xlu1 %765 }
 0xa23   :  { %v3088_v39 = vadd.f32 %v766_v37, %v758_v36  ;;  %v1199_v36 = vld [vmem:[#allocation3 + $0xa] sm:$0x3] }
 0xa25   :  { %2476 = vtanh.f32 %v3088_v39 }
 0xa2f   :  { %v2475_v40 = vpop.eup %2474 }
 0xa30   :  { %875 = vrot.lane.b32.xlu0 %v2475_v40, %s2770_s4 }
 0xa32   :  { %v2477_v41 = vpop.eup %2476 }
 0xa33   :  { %771 = vrot.lane.b32.xlu1 %v2477_v41, %s2770_s4 }
 0xaa2   :  { %v876_v42 = vpop.permute.xlu0 %875 }
 0xaa3   :  { %v878_v43 = vmul.f32 %v2471_v19, %v876_v42 }
 0xaa5   :  { %880 = vrot.lane.b32.xlu1 %v878_v43, %s2760_s18  ;;  %v772_v44 = vpop.permute.xlu1 %771 }
 0xaa6   :  { %v3094_v45 = vmul.f32 %v2473_v28, %v772_v44 }
 0xaa8   :  { %883 = vrot.lane.b32.xlu0 %v3094_v45, %s2770_s4 }
 0xb17   :  { %v881_v46 = vpop.permute.xlu1 %880 }
 0xb18   :  { %2283 = vmatmul.mubr.msk.f32.vlgmr.msra.gmra.mxu1 %vm136_vm1, %v881_v46 }
 0xb19   :  { %2286 = vmatpush3.msra.mxu1 %v2905_v22  ;;  %2301 = vmatprep.mubr.msk.f32.mxu1 %vm2769_vm0, %v2768_v0 }
 0xb1a   :  { %2287 = vmatprep.subr.mxu1 %v2768_v0  ;;  %v884_v47 = vpop.permute.xlu0 %883 }
 0xb1b   :  { %2288 = vmatpush3.msra.mxu1 %v2907_v23  ;;  %v886_v48 = vsel %vm136_vm1, %v881_v46, %v884_v47 }
 0xb1c   :  { %2289 = vmatprep.subr.mxu1 %v2768_v0  ;;  %2272 = vmatmul.mubr.msk.f32.vlgmr.msra.gmra.mxu0 %vm254_vm2, %v886_v48 }
 0xb1d   :  { %2290 = vmatpush3.msra.mxu1 %v2911_v24  ;;  %2305 = vmatpush3.msra.mxu0 %v2872_v1 }
 0xb1e   :  { %2291 = vmatprep.subr.mxu1 %v2768_v0  ;;  %2306 = vmatprep.subr.mxu0 %v2768_v0 }
 0xb1f   :  { %2292 = vmatpush3.msra.mxu1 %v2915_v25  ;;  %2307 = vmatpush3.msra.mxu0 %v2874_v2 }
 0xb20   :  { %2293 = vmatprep.subr.mxu1 %v2768_v0  ;;  %2308 = vmatprep.subr.mxu0 %v2768_v0 }
 0xb21   :  { %2294 = vmatpush3.msra.mxu1 %v2919_v26  ;;  %2309 = vmatpush3.msra.mxu0 %v2878_v3 }
 0xb22   :  { %2295 = vmatprep.subr.mxu1 %v2768_v0  ;;  %2310 = vmatprep.subr.mxu0 %v2768_v0 }
 0xb23   :  { %2312 = vmatprep.mubr.msk.f32.mxu0 %vm2769_vm0, %v2768_v0  ;;  %2311 = vmatpush3.msra.mxu0 %v2882_v4 }
 0xb24   :  { %2296 = vmatpush3.msra.mxu1 %v2923_v27  ;;  %2315 = vmatprep.subr.mxu0 %v2768_v0 }
 0xb25   :  { %2297 = vmatprep.subr.mxu1 %v2768_v0 }
 0xb26   :  { %2298 = vmatpush3.msra.mxu1 %v2927_v29 }
 0xb27   :  { %2299 = vmatprep.subr.mxu1 %v2768_v0 }
 0xb28   :  { %2300 = vmatpush3.msra.mxu1 %v2935_v31 }
 0xb29   :  { %2334 = vmatprep.subr.mxu1 %v2768_v0 }
 0xbd8   :  { %v1059_v50 = vpop.f32.mrf.mxu1 }
 0xbd9   :  { %v1063_v51 = vadd.f32 %v1059_v50, %v990_v49 }
 0xbda   :  { %v2284_v52 = vpop.f32.mrf.mxu1 }
 0xbdb   :  { %2478 = vtanh.f32 %v1063_v51  ;;  %v2016_v59 = vmul.f32 -1.442695, %v1063_v51 }
 0xbdc   :  { %v956_v53 = vpop.f32.mrf.mxu0 }
 0xbdd   :  { %v957_v54 = vadd.f32 %v2974_v38, %v956_v53 }
 0xbde   :  { %v2273_v55 = vpop.f32.mrf.mxu0 }
 0xbdf   :  { %2480 = vtanh.f32 %v957_v54  ;;  %v2014_v60 = vmul.f32 -1.442695, %v957_v54 }
 0xbe0   :  { %2482 = vpow2.f32 %v2016_v59 }
 0xbe1   :  { %2484 = vpow2.f32 %v2014_v60 }
 0xbe8   :  { %v2479_v56 = vpop.eup %2478 }
 0xbe9   :  { %1073 = vrot.lane.b32.xlu0 %v2479_v56, %s2770_s4 }
 0xbec   :  { %v2481_v57 = vpop.eup %2480 }
 0xbed   :  { %969 = vrot.lane.b32.xlu1 %v2481_v57, %s2770_s4  ;;  %v2483_v61 = vpop.eup %2482 }
 0xbee   :  { %v1067_v62 = vadd.f32 1.0, %v2483_v61  ;;  %v2485_v63 = vpop.eup %2484 }
 0xbef   :  { %v963_v5 = vadd.f32 1.0, %v2485_v63 }
 0xbf0   :  { %2486 = vrcp.f32 %v1067_v62 }
 0xbf1   :  { %2488 = vrcp.f32 %v963_v5 }
 0xbfd   :  { %v2487_v6 = vpop.eup %2486 }
 0xbfe   :  { %v2489_v9 = vpop.eup %2488  ;;  %v1071_v12 = vmul.f32 %v2487_v6, %v3084_v35 }
 0xbff   :  { %v967_v16 = vmul.f32 %v2489_v9, %v3088_v39 }
 0xc5b   :  { %v1074_v7 = vpop.permute.xlu0 %1073 }
 0xc5c   :  { %v1076_v8 = vmul.f32 %v2487_v6, %v1074_v7 }
 0xc5e   :  { %1078 = vrot.lane.b32.xlu0 %v1076_v8, %s2760_s18 }
 0xc5f   :  { %v970_v10 = vpop.permute.xlu1 %969 }
 0xc60   :  { %v972_v11 = vmul.f32 %v2489_v9, %v970_v10 }
 0xc62   :  { %974 = vrot.lane.b32.xlu1 %v972_v11, %s2760_s18 }
 0xcd0   :  { %v1079_v14 = vpop.permute.xlu0 %1078 }
 0xcd1   :  { %v3135_v15 = vadd.f32 %v1079_v14, %v1071_v12 }
 0xcd3   :  { %2490 = vtanh.f32 %v3135_v15 }
 0xcd4   :  { %v975_v17 = vpop.permute.xlu1 %974 }
 0xcd5   :  { %v3139_v18 = vadd.f32 %v975_v17, %v967_v16 }
 0xcd7   :  { %2492 = vtanh.f32 %v3139_v18 }
 0xce0   :  { %v2491_v19 = vpop.eup %2490 }
 0xce1   :  { %1084 = vrot.lane.b32.xlu0 %v2491_v19, %s2770_s4 }
 0xce4   :  { %v2493_v20 = vpop.eup %2492 }
 0xce5   :  { %980 = vrot.lane.b32.xlu1 %v2493_v20, %s2770_s4 }
 0xd53   :  { %v1085_v21 = vpop.permute.xlu0 %1084 }
 0xd54   :  { %v1087_v28 = vmul.f32 %v2487_v6, %v1085_v21 }
 0xd56   :  { %1089 = vrot.lane.b32.xlu1 %v1087_v28, %s2760_s18 }
 0xd57   :  { %v981_v30 = vpop.permute.xlu1 %980 }
 0xd58   :  { %v3145_v32 = vmul.f32 %v2489_v9, %v981_v30 }
 0xd5a   :  { %1092 = vrot.lane.b32.xlu0 %v3145_v32, %s2770_s4 }
 0xdc8   :  { %v1090_v33 = vpop.permute.xlu1 %1089 }
 0xdc9   :  { %2313 = vmatmul.mubr.msk.f32.vlgmr.msra.gmra.mxu0 %vm136_vm1, %v1090_v33 }
 0xdca   :  { %2316 = vmatpush3.msra.mxu0 %v2905_v22  ;;  %2331 = vmatprep.mubr.msk.f32.mxu0 %vm2769_vm0, %v2768_v0 }
 0xdcb   :  { %2317 = vmatprep.subr.mxu0 %v2768_v0 }
 0xdcc   :  { %2318 = vmatpush3.msra.mxu0 %v2907_v23  ;;  %v1093_v34 = vpop.permute.xlu0 %1092 }
 0xdcd   :  { %2319 = vmatprep.subr.mxu0 %v2768_v0  ;;  %v1095_v35 = vsel %vm136_vm1, %v1090_v33, %v1093_v34 }
 0xdce   :  { %2320 = vmatpush3.msra.mxu0 %v2911_v24  ;;  %2302 = vmatmul.mubr.msk.f32.vlgmr.msra.gmra.mxu1 %vm254_vm2, %v1095_v35 }
 0xdcf   :  { %2321 = vmatprep.subr.mxu0 %v2768_v0  ;;  %2335 = vmatpush3.msra.mxu1 %v2872_v1 }
 0xdd0   :  { %2322 = vmatpush3.msra.mxu0 %v2915_v25  ;;  %2336 = vmatprep.subr.mxu1 %v2768_v0 }
 0xdd1   :  { %2323 = vmatprep.subr.mxu0 %v2768_v0  ;;  %2337 = vmatpush3.msra.mxu1 %v2874_v2 }
 0xdd2   :  { %2324 = vmatpush3.msra.mxu0 %v2919_v26  ;;  %2338 = vmatprep.subr.mxu1 %v2768_v0 }
 0xdd3   :  { %2342 = vmatprep.mubr.msk.f32.mxu1 %vm2769_vm0, %v2768_v0  ;;  %2339 = vmatpush3.msra.mxu1 %v2878_v3 }
 0xdd4   :  { %2325 = vmatprep.subr.mxu0 %v2768_v0  ;;  %2340 = vmatprep.subr.mxu1 %v2768_v0 }
 0xdd5   :  { %2326 = vmatpush3.msra.mxu0 %v2923_v27  ;;  %2341 = vmatpush3.msra.mxu1 %v2882_v4 }
 0xdd6   :  { %2327 = vmatprep.subr.mxu0 %v2768_v0  ;;  %2345 = vmatprep.subr.mxu1 %v2768_v0 }
 0xdd7   :  { %2328 = vmatpush3.msra.mxu0 %v2927_v29 }
 0xdd8   :  { %2329 = vmatprep.subr.mxu0 %v2768_v0 }
 0xdd9   :  { %2330 = vmatpush3.msra.mxu0 %v2935_v31 }
 0xdda   :  { %2364 = vmatprep.subr.mxu0 %v2768_v0 }
 0xe89   :  { %v1268_v37 = vpop.f32.mrf.mxu0 }
 0xe8a   :  { %v1272_v39 = vadd.f32 %v1268_v37, %v1199_v36 }
 0xe8b   :  { %v2314_v40 = vpop.f32.mrf.mxu0 }
 0xe8c   :  { %2494 = vtanh.f32 %v1272_v39  ;;  %v2020_v47 = vmul.f32 -1.442695, %v1272_v39 }
 0xe8e   :  { %v1165_v41 = vpop.f32.mrf.mxu1 }
 0xe8f   :  { %v1166_v42 = vadd.f32 %v2974_v38, %v1165_v41 }
 0xe90   :  { %v2303_v43 = vpop.f32.mrf.mxu1 }
 0xe91   :  { %2496 = vtanh.f32 %v1166_v42  ;;  %v2018_v48 = vmul.f32 -1.442695, %v1166_v42 }
 0xe92   :  { %2498 = vpow2.f32 %v2020_v47 }
 0xe93   :  { %2500 = vpow2.f32 %v2018_v48 }
 0xe99   :  { %v2495_v44 = vpop.eup %2494 }
 0xe9a   :  { %1282 = vrot.lane.b32.xlu0 %v2495_v44, %s2770_s4 }
 0xe9e   :  { %v2497_v46 = vpop.eup %2496 }
 0xe9f   :  { %1178 = vrot.lane.b32.xlu1 %v2497_v46, %s2770_s4  ;;  %v2499_v49 = vpop.eup %2498 }
 0xea0   :  { %v1276_v50 = vadd.f32 1.0, %v2499_v49  ;;  %v2501_v51 = vpop.eup %2500 }
 0xea1   :  { %v1172_v52 = vadd.f32 1.0, %v2501_v51  ;;  %v2558_v51 = vld [vmem:[#allocation11 + $0x38] sm:$0xff] }
 0xea2   :  { %2502 = vrcp.f32 %v1276_v50 }
 0xea3   :  { %2504 = vrcp.f32 %v1172_v52  ;;  %v2559_v52 = vld [vmem:[#allocation11 + $0x30] sm:$0xff] }
 0xeaf   :  { %v2503_v53 = vpop.eup %2502 }
 0xeb0   :  { %v2505_v56 = vpop.eup %2504  ;;  %v1280_v60 = vmul.f32 %v2503_v53, %v3135_v15 }
 0xeb1   :  { %v1176_v63 = vmul.f32 %v2505_v56, %v3139_v18 }
 0xf0c   :  { %v1283_v54 = vpop.permute.xlu0 %1282 }
 0xf0d   :  { %v1285_v55 = vmul.f32 %v2503_v53, %v1283_v54 }
 0xf0f   :  { %1287 = vrot.lane.b32.xlu0 %v1285_v55, %s2760_s18 }
 0xf11   :  { %v1179_v57 = vpop.permute.xlu1 %1178 }
 0xf12   :  { %v1181_v59 = vmul.f32 %v2505_v56, %v1179_v57  ;;  %v2562_v57 = vld [vmem:[#allocation11 + $0x18] sm:$0xff] }
 0xf14   :  { %1183 = vrot.lane.b32.xlu1 %v1181_v59, %s2760_s18  ;;  %v2563_v59 = vld [vmem:[#allocation11 + $0x10] sm:$0xff] }
 0xf81   :  { %v1288_v61 = vpop.permute.xlu0 %1287 }
 0xf82   :  { %v3186_v62 = vadd.f32 %v1288_v61, %v1280_v60  ;;  %v2564_v60 = vld [vmem:[#allocation11 + $0x8] sm:$0xff]  ;;  %v1617_v61 = vld [vmem:[#allocation3 + $0xe] sm:$0x3] }
 0xf84   :  { %2506 = vtanh.f32 %v3186_v62 }
 0xf86   :  { %v1184_v5 = vpop.permute.xlu1 %1183 }
 0xf87   :  { %v3190_v6 = vadd.f32 %v1184_v5, %v1176_v63 }
 0xf89   :  { %2508 = vtanh.f32 %v3190_v6 }
 0xf91   :  { %v2507_v7 = vpop.eup %2506 }
 0xf92   :  { %1293 = vrot.lane.b32.xlu0 %v2507_v7, %s2770_s4 }
 0xf96   :  { %v2509_v8 = vpop.eup %2508 }
 0xf97   :  { %1189 = vrot.lane.b32.xlu1 %v2509_v8, %s2770_s4 }
0x1004   :  { %v1294_v9 = vpop.permute.xlu0 %1293 }
0x1005   :  { %v1296_v10 = vmul.f32 %v2503_v53, %v1294_v9  ;;  %v2560_v53 = vld [vmem:[#allocation11 + $0x28] sm:$0xff] }
0x1007   :  { %1298 = vrot.lane.b32.xlu1 %v1296_v10, %s2760_s18 }
0x1009   :  { %v1190_v11 = vpop.permute.xlu1 %1189 }
0x100a   :  { %v3196_v12 = vmul.f32 %v2505_v56, %v1190_v11  ;;  %v2561_v56 = vld [vmem:[#allocation11 + $0x20] sm:$0xff] }
0x100c   :  { %1301 = vrot.lane.b32.xlu0 %v3196_v12, %s2770_s4 }
0x1079   :  { %v1299_v14 = vpop.permute.xlu1 %1298 }
0x107a   :  { %2343 = vmatmul.mubr.msk.f32.vlgmr.msra.gmra.mxu1 %vm136_vm1, %v1299_v14 }
0x107b   :  { %2346 = vmatpush3.msra.mxu1 %v2905_v22  ;;  %2361 = vmatprep.mubr.msk.f32.mxu1 %vm2769_vm0, %v2768_v0 }
0x107c   :  { %2347 = vmatprep.subr.mxu1 %v2768_v0 }
0x107d   :  { %2348 = vmatpush3.msra.mxu1 %v2907_v23 }
0x107e   :  { %2349 = vmatprep.subr.mxu1 %v2768_v0  ;;  %v1302_v15 = vpop.permute.xlu0 %1301 }
0x107f   :  { %2350 = vmatpush3.msra.mxu1 %v2911_v24  ;;  %v1304_v16 = vsel %vm136_vm1, %v1299_v14, %v1302_v15 }
0x1080   :  { %2351 = vmatprep.subr.mxu1 %v2768_v0  ;;  %2332 = vmatmul.mubr.msk.f32.vlgmr.msra.gmra.mxu0 %vm254_vm2, %v1304_v16 }
0x1081   :  { %2352 = vmatpush3.msra.mxu1 %v2915_v25  ;;  %2365 = vmatpush3.msra.mxu0 %v2872_v1  ;;  %v1408_v1 = vld [vmem:[#allocation3 + $0xc] sm:$0x3] }
0x1082   :  { %2353 = vmatprep.subr.mxu1 %v2768_v0  ;;  %2366 = vmatprep.subr.mxu0 %v2768_v0 }
0x1083   :  { %2372 = vmatprep.mubr.msk.f32.mxu0 %vm2769_vm0, %v2768_v0  ;;  %2367 = vmatpush3.msra.mxu0 %v2874_v2 }
0x1084   :  { %2354 = vmatpush3.msra.mxu1 %v2919_v26  ;;  %2368 = vmatprep.subr.mxu0 %v2768_v0 }
0x1085   :  { %2355 = vmatprep.subr.mxu1 %v2768_v0  ;;  %2369 = vmatpush3.msra.mxu0 %v2878_v3 }
0x1086   :  { %2356 = vmatpush3.msra.mxu1 %v2923_v27  ;;  %2370 = vmatprep.subr.mxu0 %v2768_v0 }
0x1087   :  { %2357 = vmatprep.subr.mxu1 %v2768_v0  ;;  %2371 = vmatpush3.msra.mxu0 %v2882_v4 }
0x1088   :  { %2358 = vmatpush3.msra.mxu1 %v2927_v29  ;;  %2375 = vmatprep.subr.mxu0 %v2768_v0 }
0x1089   :  { %2359 = vmatprep.subr.mxu1 %v2768_v0 }
0x108a   :  { %2360 = vmatpush3.msra.mxu1 %v2935_v31 }
0x113a   :  { %v1477_v2 = vpop.f32.mrf.mxu1 }
0x113b   :  { %v1481_v22 = vadd.f32 %v1477_v2, %v1408_v1 }
0x113c   :  { %v2344_v3 = vpop.f32.mrf.mxu1 }
0x113d   :  { %2510 = vtanh.f32 %v1481_v22  ;;  %v2024_v27 = vmul.f32 -1.442695, %v1481_v22 }
0x1140   :  { %v1374_v23 = vpop.f32.mrf.mxu0 }
0x1141   :  { %v1375_v24 = vadd.f32 %v2974_v38, %v1374_v23 }
0x1142   :  { %v2333_v25 = vpop.f32.mrf.mxu0 }
0x1143   :  { %2512 = vtanh.f32 %v1375_v24  ;;  %v2022_v29 = vmul.f32 -1.442695, %v1375_v24 }
0x1144   :  { %2514 = vpow2.f32 %v2024_v27 }
0x1145   :  { %2516 = vpow2.f32 %v2022_v29 }
0x114a   :  { %v2511_v26 = vpop.eup %2510 }
0x114b   :  { %1491 = vrot.lane.b32.xlu0 %v2511_v26, %s2770_s4 }
0x1150   :  { %v2513_v4 = vpop.eup %2512 }
0x1151   :  { %1387 = vrot.lane.b32.xlu1 %v2513_v4, %s2770_s4  ;;  %v2515_v17 = vpop.eup %2514 }
0x1152   :  { %v1485_v18 = vadd.f32 1.0, %v2515_v17  ;;  %v2517_v19 = vpop.eup %2516 }
0x1153   :  { %v1381_v20 = vadd.f32 1.0, %v2517_v19 }
0x1154   :  { %2518 = vrcp.f32 %v1485_v18 }
0x1155   :  { %2520 = vrcp.f32 %v1381_v20 }
0x1161   :  { %v2519_v21 = vpop.eup %2518 }
0x1162   :  { %v2521_v33 = vpop.eup %2520  ;;  %v1489_v36 = vmul.f32 %v2519_v21, %v3186_v62 }
0x1163   :  { %v1385_v40 = vmul.f32 %v2521_v33, %v3190_v6 }
0x11bd   :  { %v1492_v28 = vpop.permute.xlu0 %1491 }
0x11be   :  { %v1494_v30 = vmul.f32 %v2519_v21, %v1492_v28 }
0x11c0   :  { %1496 = vrot.lane.b32.xlu0 %v1494_v30, %s2760_s18 }
0x11c3   :  { %v1388_v34 = vpop.permute.xlu1 %1387 }
0x11c4   :  { %v1390_v35 = vmul.f32 %v2521_v33, %v1388_v34 }
0x11c6   :  { %1392 = vrot.lane.b32.xlu1 %v1390_v35, %s2760_s18 }
0x1232   :  { %v1497_v37 = vpop.permute.xlu0 %1496 }
0x1233   :  { %v3236_v39 = vadd.f32 %v1497_v37, %v1489_v36  ;;  %v2565_v36 = vld [vmem:[%s3338_s5] ss:$0 sm:$0xff]  ;;  %s2771_s5 = smov 96  }
0x1235   :  { %2522 = vtanh.f32 %v3236_v39 }
0x1238   :  { %v1393_v41 = vpop.permute.xlu1 %1392 }
0x1239   :  { %v3240_v42 = vadd.f32 %v1393_v41, %v1385_v40 }
0x123b   :  { %2524 = vtanh.f32 %v3240_v42 }
0x1242   :  { %v2523_v43 = vpop.eup %2522 }
0x1243   :  { %1502 = vrot.lane.b32.xlu0 %v2523_v43, %s2770_s4 }
0x1248   :  { %v2525_v44 = vpop.eup %2524 }
0x1249   :  { %1398 = vrot.lane.b32.xlu1 %v2525_v44, %s2770_s4 }
0x12b5   :  { %v1503_v46 = vpop.permute.xlu0 %1502 }
0x12b6   :  { %v1505_v47 = vmul.f32 %v2519_v21, %v1503_v46 }
0x12b8   :  { %1507 = vrot.lane.b32.xlu1 %v1505_v47, %s2760_s18 }
0x12bb   :  { %v1399_v48 = vpop.permute.xlu1 %1398 }
0x12bc   :  { %v3246_v49 = vmul.f32 %v2521_v33, %v1399_v48 }
0x12be   :  { %1510 = vrot.lane.b32.xlu0 %v3246_v49, %s2770_s4 }
0x132a   :  { %v1508_v50 = vpop.permute.xlu1 %1507 }
0x132b   :  { %2373 = vmatmul.mubr.msk.f32.vlgmr.msra.gmra.mxu0 %vm136_vm1, %v1508_v50 }
0x132c   :  { %2376 = vmatpush3.msra.mxu0 %v2558_v51  ;;  %2391 = vmatprep.mubr.msk.f32.mxu0 %vm2769_vm0, %v2768_v0 }
0x132d   :  { %2377 = vmatprep.subr.mxu0 %v2768_v0 }
0x132e   :  { %2378 = vmatpush3.msra.mxu0 %v2559_v52 }
0x132f   :  { %2379 = vmatprep.subr.mxu0 %v2768_v0 }
0x1330   :  { %2380 = vmatpush3.msra.mxu0 %v2560_v53  ;;  %v1511_v54 = vpop.permute.xlu0 %1510 }
0x1331   :  { %2381 = vmatprep.subr.mxu0 %v2768_v0  ;;  %v1513_v55 = vsel %vm136_vm1, %v1508_v50, %v1511_v54 }
0x1332   :  { %2382 = vmatpush3.msra.mxu0 %v2561_v56  ;;  %2362 = vmatmul.mubr.msk.f32.vlgmr.msra.gmra.mxu1 %vm254_vm2, %v1513_v55  ;;  %v1844_v55 = vld [vmem:[#allocation12 + $0x18] sm:$0xff]  ;;  %v1843_v56 = vld [vmem:[#allocation12 + $0x10] sm:$0xff] }
0x1333   :  { %2383 = vmatprep.subr.mxu0 %v2768_v0  ;;  %2394 = vmatprep.subr.mxu1 %v1844_v55 }
0x1334   :  { %2384 = vmatpush3.msra.mxu0 %v2562_v57  ;;  %2395 = vmatpush3.msra.mxu1 %v1844_v55  ;;  %v1842_v57 = vld [vmem:[#allocation12 + $0x8] sm:$0xff] }
0x1335   :  { %2385 = vmatprep.subr.mxu0 %v2768_v0  ;;  %2396 = vmatprep.subr.mxu1 %v1843_v56 }
0x1336   :  { %2386 = vmatpush3.msra.mxu0 %v2563_v59  ;;  %2397 = vmatpush3.msra.mxu1 %v1843_v56  ;;  %v1841_v59 = vld [vmem:[#allocation12] sm:$0xff] }
0x1337   :  { %2387 = vmatprep.subr.mxu0 %v2768_v0  ;;  %2398 = vmatprep.subr.mxu1 %v1842_v57 }
0x1338   :  { %2388 = vmatpush3.msra.mxu0 %v2564_v60  ;;  %2399 = vmatpush3.msra.mxu1 %v1842_v57 }
0x1339   :  { %2389 = vmatprep.subr.mxu0 %v2768_v0  ;;  %2400 = vmatprep.subr.mxu1 %v1841_v59 }
0x133a   :  { %2390 = vmatpush3.msra.mxu0 %v2935_v31  ;;  %2401 = vmatpush3.msra.mxu1 %v1841_v59 }
0x13eb   :  { %v1686_v62 = vpop.f32.mrf.mxu0 }
0x13ec   :  { %v1690_v63 = vadd.f32 %v1686_v62, %v1617_v61 }
0x13ed   :  { %v2374_v5 = vpop.f32.mrf.mxu0 }
0x13ee   :  { %2526 = vtanh.f32 %v1690_v63  ;;  %v2028_v11 = vmul.f32 -1.442695, %v1690_v63 }
0x13f2   :  { %v1583_v6 = vpop.f32.mrf.mxu1 }
0x13f3   :  { %v1584_v7 = vadd.f32 %v2974_v38, %v1583_v6 }
0x13f4   :  { %v2363_v8 = vpop.f32.mrf.mxu1 }
0x13f5   :  { %2528 = vtanh.f32 %v1584_v7  ;;  %v2026_v0 = vmul.f32 -1.442695, %v1584_v7 }
0x13f6   :  { %2530 = vpow2.f32 %v2028_v11 }
0x13f7   :  { %2532 = vpow2.f32 %v2026_v0 }
0x13fb   :  { %v2527_v9 = vpop.eup %2526 }
0x13fc   :  { %1700 = vrot.lane.b32.xlu0 %v2527_v9, %s2770_s4 }
0x1402   :  { %v2529_v10 = vpop.eup %2528 }
0x1403   :  { %1596 = vrot.lane.b32.xlu1 %v2529_v10, %s2770_s4  ;;  %v2531_v31 = vpop.eup %2530 }
0x1404   :  { %v1694_v14 = vadd.f32 1.0, %v2531_v31  ;;  %v2533_v15 = vpop.eup %2532 }
0x1405   :  { %v1590_v16 = vadd.f32 1.0, %v2533_v15 }
0x1406   :  { %2534 = vrcp.f32 %v1694_v14 }
0x1407   :  { %2536 = vrcp.f32 %v1590_v16 }
0x1413   :  { %v2535_v1 = vpop.eup %2534 }
0x1414   :  { %v2537_v22 = vpop.eup %2536  ;;  %v1698_v24 = vmul.f32 %v2535_v1, %v3236_v39 }
0x1415   :  { %v1594_v4 = vmul.f32 %v2537_v22, %v3240_v42 }
0x146e   :  { %v1701_v38 = vpop.permute.xlu0 %1700 }
0x146f   :  { %v1703_v2 = vmul.f32 %v2535_v1, %v1701_v38 }
0x1471   :  { %1705 = vrot.lane.b32.xlu0 %v1703_v2, %s2760_s18 }
0x1475   :  { %v1597_v3 = vpop.permute.xlu1 %1596 }
0x1476   :  { %v1599_v23 = vmul.f32 %v2537_v22, %v1597_v3 }
0x1478   :  { %1601 = vrot.lane.b32.xlu1 %v1599_v23, %s2760_s18 }
0x14e3   :  { %v1706_v25 = vpop.permute.xlu0 %1705 }
0x14e4   :  { %v1708_v26 = vadd.f32 %v1706_v25, %v1698_v24 }
0x14e6   :  { %2538 = vtanh.f32 %v1708_v26 }
0x14ea   :  { %v1602_v27 = vpop.permute.xlu1 %1601 }
0x14eb   :  { %v1604_v29 = vadd.f32 %v1602_v27, %v1594_v4 }
0x14ed   :  { %2540 = vtanh.f32 %v1604_v29 }
0x14f3   :  { %v2539_v17 = vpop.eup %2538 }
0x14f4   :  { %1711 = vrot.lane.b32.xlu0 %v2539_v17, %s2770_s4 }
0x14fa   :  { %v2541_v18 = vpop.eup %2540 }
0x14fb   :  { %1607 = vrot.lane.b32.xlu1 %v2541_v18, %s2770_s4 }
0x1566   :  { %v1712_v19 = vpop.permute.xlu0 %1711 }
0x1567   :  { %v1714_v20 = vmul.f32 %v2535_v1, %v1712_v19 }
0x1569   :  { %1716 = vrot.lane.b32.xlu1 %v1714_v20, %s2760_s18 }
0x156d   :  { %v1608_v21 = vpop.permute.xlu1 %1607 }
0x156e   :  { %v1610_v28 = vmul.f32 %v2537_v22, %v1608_v21 }
0x1570   :  { %1719 = vrot.lane.b32.xlu0 %v1610_v28, %s2770_s4 }
0x15db   :  { %v1717_v30 = vpop.permute.xlu1 %1716 }
0x15dc   :  { %1825 = vst.msk [vmem:[#allocation15] sm:$0x3] %vm360_vm3, %v1717_v30 }
0x15e2   :  { %v1720_v33 = vpop.permute.xlu0 %1719 }
0x15e3   :  { %v1722_v34 = vsel %vm136_vm1, %v1717_v30, %v1720_v33 }
0x15e4   :  { %2392 = vmatmul.mubr.msk.f32.vlgmr.msra.gmra.mxu0 %vm254_vm2, %v1722_v34 }
0x16a4   :  { %v1792_v35 = vpop.f32.mrf.mxu0 }
0x16a5   :  { %v1793_v37 = vadd.f32 %v2565_v36, %v1792_v35 }
0x16a6   :  { %v2393_v39 = vpop.f32.mrf.mxu0 }
0x16a7   :  { %2542 = vtanh.f32 %v1793_v37  ;;  %v2030_v41 = vmul.f32 -1.442695, %v1793_v37 }
0x16a9   :  { %2544 = vpow2.f32 %v2030_v41 }
0x16b4   :  { %v2543_v40 = vpop.eup %2542 }
0x16b5   :  { %1805 = vrot.lane.b32.xlu1 %v2543_v40, %s2770_s4 }
0x16b6   :  { %v2545_v42 = vpop.eup %2544 }
0x16b7   :  { %v1799_v43 = vadd.f32 1.0, %v2545_v42 }
0x16b9   :  { %2546 = vrcp.f32 %v1799_v43 }
0x16c6   :  { %v2547_v44 = vpop.eup %2546 }
0x16c7   :  { %v1803_v48 = vmul.f32 %v2547_v44, %v1604_v29 }
0x1727   :  { %v1806_v46 = vpop.permute.xlu1 %1805 }
0x1728   :  { %v1808_v47 = vmul.f32 %v2547_v44, %v1806_v46 }
0x172a   :  { %1810 = vrot.lane.b32.xlu0 %v1808_v47, %s2760_s18 }
0x172e   :  { %357 = vrot.lane.b32.xlu0 %v2991_v13, %s2760_s18 }
0x1732   :  { %776 = vrot.lane.b32.xlu0 %v3094_v45, %s2760_s18 }
0x1736   :  { %1194 = vrot.lane.b32.xlu0 %v3196_v12, %s2760_s18 }
0x173a   :  { %1612 = vrot.lane.b32.xlu0 %v1610_v28, %s2760_s18 }
0x173e   :  { %1829 = vrot.lane.b32.xlu0 %v1708_v26, %s2771_s5 }
0x179c   :  { %v1811_v50 = vpop.permute.xlu0 %1810 }
0x179d   :  { %v1813_v51 = vadd.f32 %v1811_v50, %v1803_v48 }
0x179f   :  { %2548 = vtanh.f32 %v1813_v51 }
0x17a0   :  { %v358_v52 = vpop.permute.xlu0 %357 }
0x17a1   :  { %361 = vst.msk [vmem:[#allocation2] sm:$0x3] %vm360_vm3, %v358_v52 }
0x17a4   :  { %v777_v53 = vpop.permute.xlu0 %776 }
0x17a5   :  { %779 = vst.msk [vmem:[#allocation2 + $0x4] sm:$0x3] %vm360_vm3, %v777_v53 }
0x17a8   :  { %v1195_v13 = vpop.permute.xlu0 %1194 }
0x17a9   :  { %1197 = vst.msk [vmem:[#allocation2 + $0x8] sm:$0x3] %vm360_vm3, %v1195_v13 }
0x17ac   :  { %v2549_v45 = vpop.eup %2548  ;;  %v1613_v12 = vpop.permute.xlu0 %1612 }
0x17ad   :  { %1615 = vst.msk [vmem:[#allocation2 + $0xc] sm:$0x3] %vm360_vm3, %v1613_v12  ;;  %1816 = vrot.lane.b32.xlu1 %v2549_v45, %s2770_s4 }
0x17b0   :  { %v1830_v54 = vpop.permute.xlu0 %1829 }
0x17b1   :  { %1832 = vst.msk [vmem:[#allocation17] sm:$0x3] %vm360_vm3, %v1830_v54  ;;  %567 = vrot.lane.b32.xlu1 %v3043_v58, %s2760_s18 }
0x17b5   :  { %985 = vrot.lane.b32.xlu1 %v3145_v32, %s2760_s18 }
0x17b9   :  { %1403 = vrot.lane.b32.xlu1 %v3246_v49, %s2760_s18 }
0x181f   :  { %v1817_v60 = vpop.permute.xlu1 %1816 }
0x1820   :  { %v1819_v58 = vmul.f32 %v2547_v44, %v1817_v60 }
0x1822   :  { %1821 = vrot.lane.b32.xlu1 %v1819_v58, %s2760_s18 }
0x1823   :  { %v568_v32 = vpop.permute.xlu1 %567 }
0x1824   :  { %570 = vst.msk [vmem:[#allocation2 + $0x2] sm:$0x3] %vm360_vm3, %v568_v32 }
0x1826   :  { %1834 = vrot.lane.b32.xlu1 %v1813_v51, %s2771_s5 }
0x1827   :  { %v986_v49 = vpop.permute.xlu1 %985 }
0x1828   :  { %988 = vst.msk [vmem:[#allocation2 + $0x6] sm:$0x3] %vm360_vm3, %v986_v49 }
0x182b   :  { %v1404_v61 = vpop.permute.xlu1 %1403 }
0x182c   :  { %1406 = vst.msk [vmem:[#allocation2 + $0xa] sm:$0x3] %vm360_vm3, %v1404_v61 }
0x182f   :  { %v1839_v62 = vld [vmem:[#allocation2] sm:$0xff] }
0x1830   :  { %2402 = vmatprep.mubr.msk.f32.mxu1 %vm136_vm1, %v1839_v62 }
0x1894   :  { %v1822_v63 = vpop.permute.xlu1 %1821 }
0x1895   :  { %1824 = vst.msk [vmem:[#allocation2 + $0xe] sm:$0x3] %vm360_vm3, %v1822_v63  ;;  %1827 = vst.msk [vmem:[#allocation15 + $0x2] sm:$0x3] %vm360_vm3, %v1822_v63 }
0x1898   :  { %v1835_v5 = vpop.permute.xlu1 %1834 }
0x1899   :  { %1838 = vst.msk [vmem:[#allocation17 + $0x2] sm:$0x3] %vm360_vm3, %v1835_v5 }
0x189c   :  { %v1840_v6 = vld [vmem:[#allocation2 + $0x8] sm:$0xff] }
0x189d   :  { %2403 = vmatmul.mubr.msk.f32.vlgmr.msra.gmra.mxu1 %vm136_vm1, %v1840_v6 }
0x189e   :  { %2697 = shalt.err (!%p2694_p6)
}
0x189f   :  { %1970 = dma.vmem_to_hbm [thread:$0]  %s1965_s30, 64, %s3342_s9, [#allocation16], %s2760_s18, %s2760_s18, %s2761_s19  }
0x18a0   :  { %s2773_s13 = smov [#allocation17]  }
0x18a1   :  { %s1976_s14 = sshll.u32 %s2773_s13, 4  ;;  %s1977_s14 = int_to_ptr.vmem [resolvable:$true] %s1976_s14 }
0x18a2   :  { %s2706_s15 = scalar_lea.vmem %s1977_s14, 64  ;;  %p2711_p8 = scmp.lt.s32.totalorder %s1977_s14, %s1977_s14 }
0x18a3   :  { %p2707_p7 = scmp.ne.s32.totalorder %s1977_s14, %s2706_s15  ;;  %p2712_p9 = scmp.lt.s32.totalorder %s2706_s15, %s2706_s15 }
0x18a5   :  { %p2713_p10 = por %p2712_p9, %p2711_p8 }
0x18a7   :  { %p2714_p11 = pnand %p2713_p10, %p2707_p7 }
0x18a9   :  { %2717 = shalt.err (!%p2714_p11)
}
0x18aa   :  { %1982 = dma.vmem_to_hbm [thread:$0]  %s1977_s14, 64, %s3343_s10, [#allocation16], %s2760_s18, %s2760_s18, %s2761_s19  }
0x18ab   :  { %v2031_v7 = vld [vmem:[%s3340_s7] ss:$0 sm:$0xff]  ;;  %s2774_s9 = smov [#allocation14]  }
0x18ac   :  { %s1952_s10 = sshll.u32 %s2774_s9, 4  ;;  %s1953_s10 = int_to_ptr.vmem [resolvable:$true] %s1952_s10 }
0x18ad   :  { %s2726_s7 = scalar_lea.vmem %s1953_s10, 256  ;;  %p2731_p13 = scmp.lt.s32.totalorder %s1953_s10, %s1953_s10 }
0x18ae   :  { %p2727_p12 = scmp.ne.s32.totalorder %s1953_s10, %s2726_s7  ;;  %p2732_p0 = scmp.lt.s32.totalorder %s2726_s7, %s2726_s7 }
0x18b0   :  { %p2733_p1 = por %p2732_p0, %p2731_p13 }
0x18b2   :  { %p2734_p2 = pnand %p2733_p1, %p2727_p12 }
0x195d   :  { %v2404_v8 = vpop.f32.mrf.mxu1 }
0x195e   :  { %v1930_v9 = vadd.f32 %v2404_v8, %v2031_v7 }
0x195f   :  { %v1924_v10 = vpop.f32.mrf.mxu1 }
0x1960   :  { %v2035_v11 = vmul.f32 -1.442695, %v1930_v9  ;;  %v1925_v0 = vadd.f32 %v2031_v7, %v1924_v10 }
0x1962   :  { %2550 = vpow2.f32 %v2035_v11  ;;  %v2034_v31 = vmul.f32 -1.442695, %v1925_v0 }
0x1964   :  { %2552 = vpow2.f32 %v2034_v31 }
0x196f   :  { %v2551_v14 = vpop.eup %2550 }
0x1970   :  { %v1940_v15 = vadd.f32 1.0, %v2551_v14 }
0x1971   :  { %v2553_v16 = vpop.eup %2552 }
0x1972   :  { %2554 = vrcp.f32 %v1940_v15  ;;  %v1939_v1 = vadd.f32 1.0, %v2553_v16 }
0x1974   :  { %2556 = vrcp.f32 %v1939_v1 }
0x197f   :  { %v2555_v38 = vpop.eup %2554 }
0x1980   :  { %1946 = vst [vmem:[#allocation14 + $0x8] sm:$0xff] %v2555_v38 }
0x1981   :  { %v2557_v2 = vpop.eup %2556 }
0x1982   :  { %1945 = vst [vmem:[#allocation14] sm:$0xff] %v2557_v2 }
0x1983   :  { %2737 = shalt.err (!%p2734_p2)
}
0x1984   :  { %1958 = dma.vmem_to_hbm [thread:$0]  %s1953_s10, 256, %s3341_s8, [#allocation5], %s2762_s23, %s2762_s23, %s2763_s24  }
0x1985   :  { %2754 = dma.done.wait [#allocation5], 256  }
0x1986   :  { %2755 = vsyncadd [#allocation5], 4294967040 }
0x1987   :  { %2756 = dma.done.wait [#allocation16], 128  }
0x1988   :  { %2757 = vsyncadd [#allocation16], 4294967168 }
0x1989   :  { %1992 = vsyncpa [#allocation4], 1 }
0x198a   :  { %1993 = vsyncpa [#allocation7], 1 }
0x198b   :  { %1994 = vsyncpa [#allocation10], 1 }
0x198c   :  { %1995 = vsyncpa [#allocation13], 1 }
0x198d   :  { %1996 = vsyncpa [#allocation5], 1 }
0x198e   :  { %1997 = vsyncpa [#allocation16], 1 }

</bundles_post_ra>
